<compile_context>
chip_gen: v5e
topology: v5e:2x2
jax: 0.10.0
libtpu: 0.0.40
codegen_flags: <defaults>
</compile_context>

<pallas_src>
import numpy as np
import jax
import jax.numpy as jnp
from jax.experimental import pallas as pl
from jax.experimental.pallas import tpu as pltpu


def _make_kernel(h, w, bt):
    """Fused per-grid-step kernel for static (h, w, images-per-step bt)."""
    hp, wp = h + 2, w + 2
    m = hp * wp                   # lanes of one zero-padded image
    g = wp + 1                    # max |tap shift| == slab margin
    L = bt * m                    # conv1 output lanes (bt concatenated images)
    Lc = L - 2 * g                # conv2 output lanes (global j in [g, g+Lc))
    Lm = Lc - (wp + 1)            # pool window-max lanes
    offs = [dy * wp + dx for dy in (-1, 0, 1) for dx in (-1, 0, 1)]

    def kernel(x_ref, imask_ref, w1_ref, s1_ref, t1_ref,
               w2_ref, s2_ref, t2_ref, sel_ref, out_ref):
        # ---- conv1: 9 accumulated bf16 MXU matmuls over shifted views --------
        xv = x_ref[...]                                      # (Cin, NB) bf16
        z1 = None
        for t, d in enumerate(offs):
            v = xv[:, g + d: g + d + L]                      # (Cin, L) bf16
            p = jnp.dot(w1_ref[t], v, preferred_element_type=jnp.float32)
            z1 = p if z1 is None else z1 + p
        a1 = jnp.maximum(z1 * s1_ref[...] + t1_ref[...], 0.0)   # (Cout, L) f32
        # one interior-mask multiply re-creates the conv zero padding for conv2
        a1 = (a1 * imask_ref[...]).astype(jnp.bfloat16)

        # ---- conv2 ------------------------------------------------------------
        z2 = None
        for t, d in enumerate(offs):
            v = a1[:, g + d: g + d + Lc]                     # (Cout, Lc) bf16
            p = jnp.dot(w2_ref[t], v, preferred_element_type=jnp.float32)
            z2 = p if z2 is None else z2 + p
        a2 = jnp.maximum(z2 * s2_ref[...] + t2_ref[...], 0.0)   # (Cout, Lc) f32

        # ---- fused 2x2 / stride-2 max pool ------------------------------------
        wm = jnp.maximum(jnp.maximum(a2[:, :Lm], a2[:, 1:Lm + 1]),
                         jnp.maximum(a2[:, wp:wp + Lm],
                                     a2[:, wp + 1:wp + 1 + Lm]))
        out_ref[...] = jnp.dot(wm, sel_ref[...],
                               preferred_element_type=jnp.float32
                               ).astype(out_ref.dtype)

    return kernel


def encoder_block_forward(x, w1, b1, bn1, w2, b2, bn2, eps=1e-5):
    """x: (B, Cin, H, W) f32.  bn* = (gamma, beta, running_mean, running_var).
    Returns (B, Cout, H//2, W//2).  Eval-mode BN, no dropout."""
    B, cin, h, w = x.shape
    cout = w1.shape[0]
    hp, wp = h + 2, w + 2
    m = hp * wp
    g = wp + 1
    n4 = (h // 2) * (w // 2)

    # images per grid step: smallest divisor of B with a lane-dense (>=128) output
    bt = B
    for cand in range(1, B + 1):
        if B % cand == 0 and cand * n4 >= 128:
            bt = cand
            break
    steps = B // bt
    L = bt * m
    Lc = L - 2 * g
    Lm = Lc - (wp + 1)
    NB = L + 2 * g
    n_out = bt * n4

    # Fold conv bias + eval-mode BN into per-channel scale / shift.
    def fold(bias, bn):
        gamma, beta, mu, var = bn
        s = gamma / jnp.sqrt(var + eps)
        return (s.reshape(-1, 1).astype(jnp.float32),
                ((bias - mu) * s + beta).reshape(-1, 1).astype(jnp.float32))

    s1, t1 = fold(b1, bn1)
    s2, t2 = fold(b2, bn2)

    # Per-tap weight matrices, tap-major: (9, Cout, Cin) bf16.
    w1t = jnp.transpose(w1, (2, 3, 0, 1)).reshape(9, cout, cin).astype(jnp.bfloat16)
    w2t = jnp.transpose(w2, (2, 3, 0, 1)).reshape(9, cout, cout).astype(jnp.bfloat16)

    # 0/1 interior mask over the padded layout (zeros the pad ring between convs).
    rr, cc = np.divmod(np.arange(m), wp)
    valid = ((rr >= 1) & (rr <= h) & (cc >= 1) & (cc <= w)).astype(np.float32)
    imask = jnp.asarray(np.tile(valid, bt)[None, :])          # (1, L) f32

    # 0/1 selection matrix compacting window-maxima at pool anchors -> pooled slab.
    sel = np.zeros((Lm, n_out), np.float32)
    for i in range(bt):
        for yo in range(h // 2):
            for xo in range(w // 2):
                q = i * m + (2 * yo + 1) * wp + (2 * xo + 1) - g
                sel[q, i * n4 + yo * (w // 2) + xo] = 1.0
    sel = jnp.asarray(sel)

    # Zero-padded input slab: bt concatenated (h+2)x(w+2) images + lane margins,
    # channels on rows, everything else on lanes; cast to bf16 for the MXU.
    xp = jnp.pad(x, ((0, 0), (0, 0), (1, 1), (1, 1)))
    xp = xp.reshape(steps, bt, cin, m).transpose(0, 2, 1, 3).reshape(steps, cin, L)
    xp = jnp.pad(xp, ((0, 0), (0, 0), (g, g))).astype(jnp.bfloat16)   # (steps, Cin, NB)

    kernel = _make_kernel(h, w, bt)

    flops = steps * 2 * (9 * cout * cin * L + 9 * cout * cout * Lc
                         + cout * Lm * n_out)
    bytes_accessed = (xp.size * 2 + w1t.size * 2 + w2t.size * 2
                      + (imask.size + sel.size + 4 * cout) * 4
                      + steps * cout * n_out * 4)

    out = pl.pallas_call(
        kernel,
        out_shape=jax.ShapeDtypeStruct((steps, cout, n_out), jnp.float32),
        grid=(steps,),
        in_specs=[
            pl.BlockSpec((None, cin, NB), lambda b: (b, 0, 0)),     # x slab (per step)
            pl.BlockSpec((1, L), lambda b: (0, 0)),                 # interior mask
            pl.BlockSpec((9, cout, cin), lambda b: (0, 0, 0)),      # conv1 tap weights
            pl.BlockSpec((cout, 1), lambda b: (0, 0)),              # scale1
            pl.BlockSpec((cout, 1), lambda b: (0, 0)),              # shift1
            pl.BlockSpec((9, cout, cout), lambda b: (0, 0, 0)),     # conv2 tap weights
            pl.BlockSpec((cout, 1), lambda b: (0, 0)),              # scale2
            pl.BlockSpec((cout, 1), lambda b: (0, 0)),              # shift2
            pl.BlockSpec((Lm, n_out), lambda b: (0, 0)),            # pool selection
        ],
        out_specs=pl.BlockSpec((None, cout, n_out), lambda b: (b, 0, 0)),
        compiler_params=pltpu.CompilerParams(
            dimension_semantics=("parallel",),
            vmem_limit_bytes=32 * 1024 * 1024),
        cost_estimate=pl.CostEstimate(flops=int(flops), transcendentals=0,
                                      bytes_accessed=int(bytes_accessed)),
    )(xp, imask, w1t, s1, t1, w2t, s2, t2, sel)

    out = out.reshape(steps, cout, bt, n4).transpose(0, 2, 1, 3)
    return out.reshape(B, cout, h // 2, w // 2)


def encoder_block_reference(x, w1, b1, bn1, w2, b2, bn2, eps=1e-5):
    """Plain-JAX mirror of the PyTorch forward (eval mode), for verification."""
    def conv_bn_relu(inp, wgt, bias, bn):
        y = jax.lax.conv_general_dilated(
            inp, wgt, window_strides=(1, 1), padding=((1, 1), (1, 1)),
            dimension_numbers=('NCHW', 'OIHW', 'NCHW'),
            precision=jax.lax.Precision.HIGHEST)
        y = y + bias[None, :, None, None]
        gamma, beta, mu, var = bn
        y = ((y - mu[None, :, None, None])
             * (gamma / jnp.sqrt(var + eps))[None, :, None, None]
             + beta[None, :, None, None])
        return jnp.maximum(y, 0.0)

    y = conv_bn_relu(x, w1, b1, bn1)
    y = conv_bn_relu(y, w2, b2, bn2)
    B, C, H, W = y.shape
    return y.reshape(B, C, H // 2, 2, W // 2, 2).max(axis=(3, 5))


if __name__ == "__main__":
    B, Cin, Cout, H, W = 2, 4, 8, 16, 16
    eps = 1e-5

    key = jax.random.PRNGKey(0)
    ks = jax.random.split(key, 13)

    x = jax.random.normal(ks[0], (B, Cin, H, W), jnp.float32)

    w1 = jax.random.normal(ks[1], (Cout, Cin, 3, 3), jnp.float32) * 0.2
    b1 = jax.random.normal(ks[2], (Cout,), jnp.float32) * 0.1
    bn1 = (1.0 + 0.1 * jax.random.normal(ks[3], (Cout,), jnp.float32),   # gamma
           0.1 * jax.random.normal(ks[4], (Cout,), jnp.float32),         # beta
           0.1 * jax.random.normal(ks[5], (Cout,), jnp.float32),         # running_mean
           0.5 + jax.random.uniform(ks[6], (Cout,), jnp.float32))        # running_var

    w2 = jax.random.normal(ks[7], (Cout, Cout, 3, 3), jnp.float32) * 0.2
    b2 = jax.random.normal(ks[8], (Cout,), jnp.float32) * 0.1
    bn2 = (1.0 + 0.1 * jax.random.normal(ks[9], (Cout,), jnp.float32),
           0.1 * jax.random.normal(ks[10], (Cout,), jnp.float32),
           0.1 * jax.random.normal(ks[11], (Cout,), jnp.float32),
           0.5 + jax.random.uniform(ks[12], (Cout,), jnp.float32))

    y = encoder_block_forward(x, w1, b1, bn1, w2, b2, bn2, eps=eps)
    y = jax.block_until_ready(y)

    y_ref = encoder_block_reference(x, w1, b1, bn1, w2, b2, bn2, eps=eps)
    assert y.shape == (B, Cout, H // 2, W // 2), y.shape
    # Tolerance sized for the deliberate bf16 cast of conv inputs / weights
    # (f32 accumulation); structural bugs would show O(1) errors.
    err = float(jnp.max(jnp.abs(y - y_ref)))
    assert jnp.allclose(y, y_ref, rtol=5e-2, atol=5e-2), f"max err {err}"

    print("KERNEL_OK")
</pallas_src>

<mosaic_0001>
module attributes {stable_mosaic.version = 11 : i64} {
  func.func @kernel(%arg0: i32, %arg1: memref<1x4x686xbf16, #tpu.memory_space<vmem>>, %arg2: memref<1x648xf32, #tpu.memory_space<vmem>>, %arg3: memref<9x8x4xbf16, #tpu.memory_space<vmem>>, %arg4: memref<8x1xf32, #tpu.memory_space<vmem>>, %arg5: memref<8x1xf32, #tpu.memory_space<vmem>>, %arg6: memref<9x8x8xbf16, #tpu.memory_space<vmem>>, %arg7: memref<8x1xf32, #tpu.memory_space<vmem>>, %arg8: memref<8x1xf32, #tpu.memory_space<vmem>>, %arg9: memref<591x128xf32, #tpu.memory_space<vmem>>, %arg10: memref<1x8x128xf32, #tpu.memory_space<vmem>>) attributes {dimension_semantics = [#tpu.dimension_semantics<parallel>], iteration_bounds = array<i64: 1>, scalar_prefetch = 0 : i64, scratch_operands = 0 : i64, tpu.core_type = #tpu.core_type<tc>, window_params = [{transform_indices = @transform_0, window_bounds = array<i64: 1, 4, 686>}, {pipeline_mode = #tpu.pipeline_mode<synchronous>, transform_indices = @transform_1, window_bounds = array<i64: 1, 648>}, {pipeline_mode = #tpu.pipeline_mode<synchronous>, transform_indices = @transform_2, window_bounds = array<i64: 9, 8, 4>}, {pipeline_mode = #tpu.pipeline_mode<synchronous>, transform_indices = @transform_3, window_bounds = array<i64: 8, 1>}, {pipeline_mode = #tpu.pipeline_mode<synchronous>, transform_indices = @transform_4, window_bounds = array<i64: 8, 1>}, {pipeline_mode = #tpu.pipeline_mode<synchronous>, transform_indices = @transform_5, window_bounds = array<i64: 9, 8, 8>}, {pipeline_mode = #tpu.pipeline_mode<synchronous>, transform_indices = @transform_6, window_bounds = array<i64: 8, 1>}, {pipeline_mode = #tpu.pipeline_mode<synchronous>, transform_indices = @transform_7, window_bounds = array<i64: 8, 1>}, {pipeline_mode = #tpu.pipeline_mode<synchronous>, transform_indices = @transform_8, window_bounds = array<i64: 591, 128>}, {transform_indices = @transform_9, window_bounds = array<i64: 1, 8, 128>}]} {
    %c0 = arith.constant 0 : index
    %c0_0 = arith.constant 0 : index
    %c0_1 = arith.constant 0 : index
    %0 = vector.load %arg1[%c0, %c0_0, %c0_1] : memref<1x4x686xbf16, #tpu.memory_space<vmem>>, vector<1x4x686xbf16>
    %1 = vector.shape_cast %0 : vector<1x4x686xbf16> to vector<4x686xbf16>
    %2 = vector.extract_strided_slice %1 {offsets = [0, 0], sizes = [4, 648], strides = [1, 1]} : vector<4x686xbf16> to vector<4x648xbf16>
    %c0_2 = arith.constant 0 : index
    %c0_3 = arith.constant 0 : index
    %c0_4 = arith.constant 0 : index
    %3 = vector.load %arg3[%c0_2, %c0_3, %c0_4] : memref<9x8x4xbf16, #tpu.memory_space<vmem>>, vector<1x8x4xbf16>
    %4 = vector.shape_cast %3 : vector<1x8x4xbf16> to vector<8x4xbf16>
    %cst = arith.constant dense<0.000000e+00> : vector<8x648xf32>
    %5 = tpu.matmul %4, %2, %cst {dimension_numbers = #tpu.dot_dimension_numbers<[1], [0], [0], [1], [0, 0, 1, 1], [], []>} : vector<8x4xbf16>, vector<4x648xbf16>, vector<8x648xf32> -> vector<8x648xf32>
    %6 = vector.extract_strided_slice %1 {offsets = [0, 1], sizes = [4, 648], strides = [1, 1]} : vector<4x686xbf16> to vector<4x648xbf16>
    %c1 = arith.constant 1 : index
    %c0_5 = arith.constant 0 : index
    %c0_6 = arith.constant 0 : index
    %7 = vector.load %arg3[%c1, %c0_5, %c0_6] : memref<9x8x4xbf16, #tpu.memory_space<vmem>>, vector<1x8x4xbf16>
    %8 = vector.shape_cast %7 : vector<1x8x4xbf16> to vector<8x4xbf16>
    %cst_7 = arith.constant dense<0.000000e+00> : vector<8x648xf32>
    %9 = tpu.matmul %8, %6, %cst_7 {dimension_numbers = #tpu.dot_dimension_numbers<[1], [0], [0], [1], [0, 0, 1, 1], [], []>} : vector<8x4xbf16>, vector<4x648xbf16>, vector<8x648xf32> -> vector<8x648xf32>
    %10 = arith.addf %5, %9 : vector<8x648xf32>
    %11 = vector.extract_strided_slice %1 {offsets = [0, 2], sizes = [4, 648], strides = [1, 1]} : vector<4x686xbf16> to vector<4x648xbf16>
    %c2 = arith.constant 2 : index
    %c0_8 = arith.constant 0 : index
    %c0_9 = arith.constant 0 : index
    %12 = vector.load %arg3[%c2, %c0_8, %c0_9] : memref<9x8x4xbf16, #tpu.memory_space<vmem>>, vector<1x8x4xbf16>
    %13 = vector.shape_cast %12 : vector<1x8x4xbf16> to vector<8x4xbf16>
    %cst_10 = arith.constant dense<0.000000e+00> : vector<8x648xf32>
    %14 = tpu.matmul %13, %11, %cst_10 {dimension_numbers = #tpu.dot_dimension_numbers<[1], [0], [0], [1], [0, 0, 1, 1], [], []>} : vector<8x4xbf16>, vector<4x648xbf16>, vector<8x648xf32> -> vector<8x648xf32>
    %15 = arith.addf %10, %14 : vector<8x648xf32>
    %16 = vector.extract_strided_slice %1 {offsets = [0, 18], sizes = [4, 648], strides = [1, 1]} : vector<4x686xbf16> to vector<4x648xbf16>
    %c3 = arith.constant 3 : index
    %c0_11 = arith.constant 0 : index
    %c0_12 = arith.constant 0 : index
    %17 = vector.load %arg3[%c3, %c0_11, %c0_12] : memref<9x8x4xbf16, #tpu.memory_space<vmem>>, vector<1x8x4xbf16>
    %18 = vector.shape_cast %17 : vector<1x8x4xbf16> to vector<8x4xbf16>
    %cst_13 = arith.constant dense<0.000000e+00> : vector<8x648xf32>
    %19 = tpu.matmul %18, %16, %cst_13 {dimension_numbers = #tpu.dot_dimension_numbers<[1], [0], [0], [1], [0, 0, 1, 1], [], []>} : vector<8x4xbf16>, vector<4x648xbf16>, vector<8x648xf32> -> vector<8x648xf32>
    %20 = arith.addf %15, %19 : vector<8x648xf32>
    %21 = vector.extract_strided_slice %1 {offsets = [0, 19], sizes = [4, 648], strides = [1, 1]} : vector<4x686xbf16> to vector<4x648xbf16>
    %c4 = arith.constant 4 : index
    %c0_14 = arith.constant 0 : index
    %c0_15 = arith.constant 0 : index
    %22 = vector.load %arg3[%c4, %c0_14, %c0_15] : memref<9x8x4xbf16, #tpu.memory_space<vmem>>, vector<1x8x4xbf16>
    %23 = vector.shape_cast %22 : vector<1x8x4xbf16> to vector<8x4xbf16>
    %cst_16 = arith.constant dense<0.000000e+00> : vector<8x648xf32>
    %24 = tpu.matmul %23, %21, %cst_16 {dimension_numbers = #tpu.dot_dimension_numbers<[1], [0], [0], [1], [0, 0, 1, 1], [], []>} : vector<8x4xbf16>, vector<4x648xbf16>, vector<8x648xf32> -> vector<8x648xf32>
    %25 = arith.addf %20, %24 : vector<8x648xf32>
    %26 = vector.extract_strided_slice %1 {offsets = [0, 20], sizes = [4, 648], strides = [1, 1]} : vector<4x686xbf16> to vector<4x648xbf16>
    %c5 = arith.constant 5 : index
    %c0_17 = arith.constant 0 : index
    %c0_18 = arith.constant 0 : index
    %27 = vector.load %arg3[%c5, %c0_17, %c0_18] : memref<9x8x4xbf16, #tpu.memory_space<vmem>>, vector<1x8x4xbf16>
    %28 = vector.shape_cast %27 : vector<1x8x4xbf16> to vector<8x4xbf16>
    %cst_19 = arith.constant dense<0.000000e+00> : vector<8x648xf32>
    %29 = tpu.matmul %28, %26, %cst_19 {dimension_numbers = #tpu.dot_dimension_numbers<[1], [0], [0], [1], [0, 0, 1, 1], [], []>} : vector<8x4xbf16>, vector<4x648xbf16>, vector<8x648xf32> -> vector<8x648xf32>
    %30 = arith.addf %25, %29 : vector<8x648xf32>
    %31 = vector.extract_strided_slice %1 {offsets = [0, 36], sizes = [4, 648], strides = [1, 1]} : vector<4x686xbf16> to vector<4x648xbf16>
    %c6 = arith.constant 6 : index
    %c0_20 = arith.constant 0 : index
    %c0_21 = arith.constant 0 : index
    %32 = vector.load %arg3[%c6, %c0_20, %c0_21] : memref<9x8x4xbf16, #tpu.memory_space<vmem>>, vector<1x8x4xbf16>
    %33 = vector.shape_cast %32 : vector<1x8x4xbf16> to vector<8x4xbf16>
    %cst_22 = arith.constant dense<0.000000e+00> : vector<8x648xf32>
    %34 = tpu.matmul %33, %31, %cst_22 {dimension_numbers = #tpu.dot_dimension_numbers<[1], [0], [0], [1], [0, 0, 1, 1], [], []>} : vector<8x4xbf16>, vector<4x648xbf16>, vector<8x648xf32> -> vector<8x648xf32>
    %35 = arith.addf %30, %34 : vector<8x648xf32>
    %36 = vector.extract_strided_slice %1 {offsets = [0, 37], sizes = [4, 648], strides = [1, 1]} : vector<4x686xbf16> to vector<4x648xbf16>
    %c7 = arith.constant 7 : index
    %c0_23 = arith.constant 0 : index
    %c0_24 = arith.constant 0 : index
    %37 = vector.load %arg3[%c7, %c0_23, %c0_24] : memref<9x8x4xbf16, #tpu.memory_space<vmem>>, vector<1x8x4xbf16>
    %38 = vector.shape_cast %37 : vector<1x8x4xbf16> to vector<8x4xbf16>
    %cst_25 = arith.constant dense<0.000000e+00> : vector<8x648xf32>
    %39 = tpu.matmul %38, %36, %cst_25 {dimension_numbers = #tpu.dot_dimension_numbers<[1], [0], [0], [1], [0, 0, 1, 1], [], []>} : vector<8x4xbf16>, vector<4x648xbf16>, vector<8x648xf32> -> vector<8x648xf32>
    %40 = arith.addf %35, %39 : vector<8x648xf32>
    %41 = vector.extract_strided_slice %1 {offsets = [0, 38], sizes = [4, 648], strides = [1, 1]} : vector<4x686xbf16> to vector<4x648xbf16>
    %c8 = arith.constant 8 : index
    %c0_26 = arith.constant 0 : index
    %c0_27 = arith.constant 0 : index
    %42 = vector.load %arg3[%c8, %c0_26, %c0_27] : memref<9x8x4xbf16, #tpu.memory_space<vmem>>, vector<1x8x4xbf16>
    %43 = vector.shape_cast %42 : vector<1x8x4xbf16> to vector<8x4xbf16>
    %cst_28 = arith.constant dense<0.000000e+00> : vector<8x648xf32>
    %44 = tpu.matmul %43, %41, %cst_28 {dimension_numbers = #tpu.dot_dimension_numbers<[1], [0], [0], [1], [0, 0, 1, 1], [], []>} : vector<8x4xbf16>, vector<4x648xbf16>, vector<8x648xf32> -> vector<8x648xf32>
    %45 = arith.addf %40, %44 : vector<8x648xf32>
    %c0_29 = arith.constant 0 : index
    %c0_30 = arith.constant 0 : index
    %46 = vector.load %arg4[%c0_29, %c0_30] : memref<8x1xf32, #tpu.memory_space<vmem>>, vector<8x1xf32>
    %47 = vector.broadcast %46 : vector<8x1xf32> to vector<8x648xf32>
    %48 = arith.mulf %45, %47 : vector<8x648xf32>
    %c0_31 = arith.constant 0 : index
    %c0_32 = arith.constant 0 : index
    %49 = vector.load %arg5[%c0_31, %c0_32] : memref<8x1xf32, #tpu.memory_space<vmem>>, vector<8x1xf32>
    %50 = vector.broadcast %49 : vector<8x1xf32> to vector<8x648xf32>
    %51 = arith.addf %48, %50 : vector<8x648xf32>
    %cst_33 = arith.constant 0.000000e+00 : f32
    %52 = vector.broadcast %cst_33 : f32 to vector<8x648xf32>
    %53 = arith.maximumf %51, %52 : vector<8x648xf32>
    %c0_34 = arith.constant 0 : index
    %c0_35 = arith.constant 0 : index
    %54 = vector.load %arg2[%c0_34, %c0_35] : memref<1x648xf32, #tpu.memory_space<vmem>>, vector<1x648xf32>
    %55 = vector.broadcast %54 : vector<1x648xf32> to vector<8x648xf32>
    %56 = arith.mulf %53, %55 : vector<8x648xf32>
    %57 = arith.truncf %56 : vector<8x648xf32> to vector<8x648xbf16>
    %58 = vector.extract_strided_slice %57 {offsets = [0, 0], sizes = [8, 610], strides = [1, 1]} : vector<8x648xbf16> to vector<8x610xbf16>
    %c0_36 = arith.constant 0 : index
    %c0_37 = arith.constant 0 : index
    %c0_38 = arith.constant 0 : index
    %59 = vector.load %arg6[%c0_36, %c0_37, %c0_38] : memref<9x8x8xbf16, #tpu.memory_space<vmem>>, vector<1x8x8xbf16>
    %60 = vector.shape_cast %59 : vector<1x8x8xbf16> to vector<8x8xbf16>
    %cst_39 = arith.constant dense<0.000000e+00> : vector<8x610xf32>
    %61 = tpu.matmul %60, %58, %cst_39 {dimension_numbers = #tpu.dot_dimension_numbers<[1], [0], [0], [1], [0, 0, 1, 1], [], []>} : vector<8x8xbf16>, vector<8x610xbf16>, vector<8x610xf32> -> vector<8x610xf32>
    %62 = vector.extract_strided_slice %57 {offsets = [0, 1], sizes = [8, 610], strides = [1, 1]} : vector<8x648xbf16> to vector<8x610xbf16>
    %c1_40 = arith.constant 1 : index
    %c0_41 = arith.constant 0 : index
    %c0_42 = arith.constant 0 : index
    %63 = vector.load %arg6[%c1_40, %c0_41, %c0_42] : memref<9x8x8xbf16, #tpu.memory_space<vmem>>, vector<1x8x8xbf16>
    %64 = vector.shape_cast %63 : vector<1x8x8xbf16> to vector<8x8xbf16>
    %cst_43 = arith.constant dense<0.000000e+00> : vector<8x610xf32>
    %65 = tpu.matmul %64, %62, %cst_43 {dimension_numbers = #tpu.dot_dimension_numbers<[1], [0], [0], [1], [0, 0, 1, 1], [], []>} : vector<8x8xbf16>, vector<8x610xbf16>, vector<8x610xf32> -> vector<8x610xf32>
    %66 = arith.addf %61, %65 : vector<8x610xf32>
    %67 = vector.extract_strided_slice %57 {offsets = [0, 2], sizes = [8, 610], strides = [1, 1]} : vector<8x648xbf16> to vector<8x610xbf16>
    %c2_44 = arith.constant 2 : index
    %c0_45 = arith.constant 0 : index
    %c0_46 = arith.constant 0 : index
    %68 = vector.load %arg6[%c2_44, %c0_45, %c0_46] : memref<9x8x8xbf16, #tpu.memory_space<vmem>>, vector<1x8x8xbf16>
    %69 = vector.shape_cast %68 : vector<1x8x8xbf16> to vector<8x8xbf16>
    %cst_47 = arith.constant dense<0.000000e+00> : vector<8x610xf32>
    %70 = tpu.matmul %69, %67, %cst_47 {dimension_numbers = #tpu.dot_dimension_numbers<[1], [0], [0], [1], [0, 0, 1, 1], [], []>} : vector<8x8xbf16>, vector<8x610xbf16>, vector<8x610xf32> -> vector<8x610xf32>
    %71 = arith.addf %66, %70 : vector<8x610xf32>
    %72 = vector.extract_strided_slice %57 {offsets = [0, 18], sizes = [8, 610], strides = [1, 1]} : vector<8x648xbf16> to vector<8x610xbf16>
    %c3_48 = arith.constant 3 : index
    %c0_49 = arith.constant 0 : index
    %c0_50 = arith.constant 0 : index
    %73 = vector.load %arg6[%c3_48, %c0_49, %c0_50] : memref<9x8x8xbf16, #tpu.memory_space<vmem>>, vector<1x8x8xbf16>
    %74 = vector.shape_cast %73 : vector<1x8x8xbf16> to vector<8x8xbf16>
    %cst_51 = arith.constant dense<0.000000e+00> : vector<8x610xf32>
    %75 = tpu.matmul %74, %72, %cst_51 {dimension_numbers = #tpu.dot_dimension_numbers<[1], [0], [0], [1], [0, 0, 1, 1], [], []>} : vector<8x8xbf16>, vector<8x610xbf16>, vector<8x610xf32> -> vector<8x610xf32>
    %76 = arith.addf %71, %75 : vector<8x610xf32>
    %77 = vector.extract_strided_slice %57 {offsets = [0, 19], sizes = [8, 610], strides = [1, 1]} : vector<8x648xbf16> to vector<8x610xbf16>
    %c4_52 = arith.constant 4 : index
    %c0_53 = arith.constant 0 : index
    %c0_54 = arith.constant 0 : index
    %78 = vector.load %arg6[%c4_52, %c0_53, %c0_54] : memref<9x8x8xbf16, #tpu.memory_space<vmem>>, vector<1x8x8xbf16>
    %79 = vector.shape_cast %78 : vector<1x8x8xbf16> to vector<8x8xbf16>
    %cst_55 = arith.constant dense<0.000000e+00> : vector<8x610xf32>
    %80 = tpu.matmul %79, %77, %cst_55 {dimension_numbers = #tpu.dot_dimension_numbers<[1], [0], [0], [1], [0, 0, 1, 1], [], []>} : vector<8x8xbf16>, vector<8x610xbf16>, vector<8x610xf32> -> vector<8x610xf32>
    %81 = arith.addf %76, %80 : vector<8x610xf32>
    %82 = vector.extract_strided_slice %57 {offsets = [0, 20], sizes = [8, 610], strides = [1, 1]} : vector<8x648xbf16> to vector<8x610xbf16>
    %c5_56 = arith.constant 5 : index
    %c0_57 = arith.constant 0 : index
    %c0_58 = arith.constant 0 : index
    %83 = vector.load %arg6[%c5_56, %c0_57, %c0_58] : memref<9x8x8xbf16, #tpu.memory_space<vmem>>, vector<1x8x8xbf16>
    %84 = vector.shape_cast %83 : vector<1x8x8xbf16> to vector<8x8xbf16>
    %cst_59 = arith.constant dense<0.000000e+00> : vector<8x610xf32>
    %85 = tpu.matmul %84, %82, %cst_59 {dimension_numbers = #tpu.dot_dimension_numbers<[1], [0], [0], [1], [0, 0, 1, 1], [], []>} : vector<8x8xbf16>, vector<8x610xbf16>, vector<8x610xf32> -> vector<8x610xf32>
    %86 = arith.addf %81, %85 : vector<8x610xf32>
    %87 = vector.extract_strided_slice %57 {offsets = [0, 36], sizes = [8, 610], strides = [1, 1]} : vector<8x648xbf16> to vector<8x610xbf16>
    %c6_60 = arith.constant 6 : index
    %c0_61 = arith.constant 0 : index
    %c0_62 = arith.constant 0 : index
    %88 = vector.load %arg6[%c6_60, %c0_61, %c0_62] : memref<9x8x8xbf16, #tpu.memory_space<vmem>>, vector<1x8x8xbf16>
    %89 = vector.shape_cast %88 : vector<1x8x8xbf16> to vector<8x8xbf16>
    %cst_63 = arith.constant dense<0.000000e+00> : vector<8x610xf32>
    %90 = tpu.matmul %89, %87, %cst_63 {dimension_numbers = #tpu.dot_dimension_numbers<[1], [0], [0], [1], [0, 0, 1, 1], [], []>} : vector<8x8xbf16>, vector<8x610xbf16>, vector<8x610xf32> -> vector<8x610xf32>
    %91 = arith.addf %86, %90 : vector<8x610xf32>
    %92 = vector.extract_strided_slice %57 {offsets = [0, 37], sizes = [8, 610], strides = [1, 1]} : vector<8x648xbf16> to vector<8x610xbf16>
    %c7_64 = arith.constant 7 : index
    %c0_65 = arith.constant 0 : index
    %c0_66 = arith.constant 0 : index
    %93 = vector.load %arg6[%c7_64, %c0_65, %c0_66] : memref<9x8x8xbf16, #tpu.memory_space<vmem>>, vector<1x8x8xbf16>
    %94 = vector.shape_cast %93 : vector<1x8x8xbf16> to vector<8x8xbf16>
    %cst_67 = arith.constant dense<0.000000e+00> : vector<8x610xf32>
    %95 = tpu.matmul %94, %92, %cst_67 {dimension_numbers = #tpu.dot_dimension_numbers<[1], [0], [0], [1], [0, 0, 1, 1], [], []>} : vector<8x8xbf16>, vector<8x610xbf16>, vector<8x610xf32> -> vector<8x610xf32>
    %96 = arith.addf %91, %95 : vector<8x610xf32>
    %97 = vector.extract_strided_slice %57 {offsets = [0, 38], sizes = [8, 610], strides = [1, 1]} : vector<8x648xbf16> to vector<8x610xbf16>
    %c8_68 = arith.constant 8 : index
    %c0_69 = arith.constant 0 : index
    %c0_70 = arith.constant 0 : index
    %98 = vector.load %arg6[%c8_68, %c0_69, %c0_70] : memref<9x8x8xbf16, #tpu.memory_space<vmem>>, vector<1x8x8xbf16>
    %99 = vector.shape_cast %98 : vector<1x8x8xbf16> to vector<8x8xbf16>
    %cst_71 = arith.constant dense<0.000000e+00> : vector<8x610xf32>
    %100 = tpu.matmul %99, %97, %cst_71 {dimension_numbers = #tpu.dot_dimension_numbers<[1], [0], [0], [1], [0, 0, 1, 1], [], []>} : vector<8x8xbf16>, vector<8x610xbf16>, vector<8x610xf32> -> vector<8x610xf32>
    %101 = arith.addf %96, %100 : vector<8x610xf32>
    %c0_72 = arith.constant 0 : index
    %c0_73 = arith.constant 0 : index
    %102 = vector.load %arg7[%c0_72, %c0_73] : memref<8x1xf32, #tpu.memory_space<vmem>>, vector<8x1xf32>
    %103 = vector.broadcast %102 : vector<8x1xf32> to vector<8x610xf32>
    %104 = arith.mulf %101, %103 : vector<8x610xf32>
    %c0_74 = arith.constant 0 : index
    %c0_75 = arith.constant 0 : index
    %105 = vector.load %arg8[%c0_74, %c0_75] : memref<8x1xf32, #tpu.memory_space<vmem>>, vector<8x1xf32>
    %106 = vector.broadcast %105 : vector<8x1xf32> to vector<8x610xf32>
    %107 = arith.addf %104, %106 : vector<8x610xf32>
    %cst_76 = arith.constant 0.000000e+00 : f32
    %108 = vector.broadcast %cst_76 : f32 to vector<8x610xf32>
    %109 = arith.maximumf %107, %108 : vector<8x610xf32>
    %110 = vector.extract_strided_slice %109 {offsets = [0, 0], sizes = [8, 591], strides = [1, 1]} : vector<8x610xf32> to vector<8x591xf32>
    %111 = vector.extract_strided_slice %109 {offsets = [0, 1], sizes = [8, 591], strides = [1, 1]} : vector<8x610xf32> to vector<8x591xf32>
    %112 = arith.maximumf %110, %111 : vector<8x591xf32>
    %113 = vector.extract_strided_slice %109 {offsets = [0, 18], sizes = [8, 591], strides = [1, 1]} : vector<8x610xf32> to vector<8x591xf32>
    %114 = vector.extract_strided_slice %109 {offsets = [0, 19], sizes = [8, 591], strides = [1, 1]} : vector<8x610xf32> to vector<8x591xf32>
    %115 = arith.maximumf %113, %114 : vector<8x591xf32>
    %116 = arith.maximumf %112, %115 : vector<8x591xf32>
    %c0_77 = arith.constant 0 : index
    %c0_78 = arith.constant 0 : index
    %117 = vector.load %arg9[%c0_77, %c0_78] : memref<591x128xf32, #tpu.memory_space<vmem>>, vector<591x128xf32>
    %cst_79 = arith.constant dense<0.000000e+00> : vector<8x128xf32>
    %118 = tpu.matmul %116, %117, %cst_79 {dimension_numbers = #tpu.dot_dimension_numbers<[1], [0], [0], [1], [0, 0, 1, 1], [], []>} : vector<8x591xf32>, vector<591x128xf32>, vector<8x128xf32> -> vector<8x128xf32>
    %c0_80 = arith.constant 0 : index
    %c0_81 = arith.constant 0 : index
    %c0_82 = arith.constant 0 : index
    %119 = vector.load %arg10[%c0_80, %c0_81, %c0_82] : memref<1x8x128xf32, #tpu.memory_space<vmem>>, vector<1x8x128xf32>
    %120 = vector.shape_cast %119 : vector<1x8x128xf32> to vector<8x128xf32>
    %121 = vector.shape_cast %118 : vector<8x128xf32> to vector<1x8x128xf32>
    tpu.vector_store %arg10[%c0_80, %c0_81, %c0_82], %121 {strides = array<i32>} : memref<1x8x128xf32, #tpu.memory_space<vmem>>, vector<1x8x128xf32>,
    return
  }
  func.func @transform_0(%arg0: i32) -> (i32, i32, i32) {
    %c0_i32 = arith.constant 0 : i32
    %c0_i32_0 = arith.constant 0 : i32
    %c0_i32_1 = arith.constant 0 : i32
    return %arg0, %c0_i32, %c0_i32_0 : i32, i32, i32
  }
  func.func @transform_1(%arg0: i32) -> (i32, i32) {
    %c0_i32 = arith.constant 0 : i32
    %c0_i32_0 = arith.constant 0 : i32
    %c0_i32_1 = arith.constant 0 : i32
    return %c0_i32, %c0_i32_0 : i32, i32
  }
  func.func @transform_2(%arg0: i32) -> (i32, i32, i32) {
    %c0_i32 = arith.constant 0 : i32
    %c0_i32_0 = arith.constant 0 : i32
    %c0_i32_1 = arith.constant 0 : i32
    %c0_i32_2 = arith.constant 0 : i32
    return %c0_i32, %c0_i32_0, %c0_i32_1 : i32, i32, i32
  }
  func.func @transform_3(%arg0: i32) -> (i32, i32) {
    %c0_i32 = arith.constant 0 : i32
    %c0_i32_0 = arith.constant 0 : i32
    %c0_i32_1 = arith.constant 0 : i32
    return %c0_i32, %c0_i32_0 : i32, i32
  }
  func.func @transform_4(%arg0: i32) -> (i32, i32) {
    %c0_i32 = arith.constant 0 : i32
    %c0_i32_0 = arith.constant 0 : i32
    %c0_i32_1 = arith.constant 0 : i32
    return %c0_i32, %c0_i32_0 : i32, i32
  }
  func.func @transform_5(%arg0: i32) -> (i32, i32, i32) {
    %c0_i32 = arith.constant 0 : i32
    %c0_i32_0 = arith.constant 0 : i32
    %c0_i32_1 = arith.constant 0 : i32
    %c0_i32_2 = arith.constant 0 : i32
    return %c0_i32, %c0_i32_0, %c0_i32_1 : i32, i32, i32
  }
  func.func @transform_6(%arg0: i32) -> (i32, i32) {
    %c0_i32 = arith.constant 0 : i32
    %c0_i32_0 = arith.constant 0 : i32
    %c0_i32_1 = arith.constant 0 : i32
    return %c0_i32, %c0_i32_0 : i32, i32
  }
  func.func @transform_7(%arg0: i32) -> (i32, i32) {
    %c0_i32 = arith.constant 0 : i32
    %c0_i32_0 = arith.constant 0 : i32
    %c0_i32_1 = arith.constant 0 : i32
    return %c0_i32, %c0_i32_0 : i32, i32
  }
  func.func @transform_8(%arg0: i32) -> (i32, i32) {
    %c0_i32 = arith.constant 0 : i32
    %c0_i32_0 = arith.constant 0 : i32
    %c0_i32_1 = arith.constant 0 : i32
    return %c0_i32, %c0_i32_0 : i32, i32
  }
  func.func @transform_9(%arg0: i32) -> (i32, i32, i32) {
    %c0_i32 = arith.constant 0 : i32
    %c0_i32_0 = arith.constant 0 : i32
    %c0_i32_1 = arith.constant 0 : i32
    return %arg0, %c0_i32, %c0_i32_0 : i32, i32, i32
  }
}

</mosaic_0001>

<bundles_post_ra>
// kernel: tpu_custom_call.1
= control target key start
LH: loop header
LB: loop body
LE: loop exit
PB: predicated region body
PF: predicated region fallthrough
CT: control target
= control target key end

     0   :  { %14 = vsyncpa [#allocation3], 0  ;;  %s3429_s0 = inlined_call_operand.vmem [shape: bf16[1,4,686], index: 0, kind: input, shape index: {}]   ;;  %s3430_s1 = inlined_call_operand.vmem [shape: f32[1,648], index: 1, kind: input, shape index: {}]   ;;  %s3431_s2 = inlined_call_operand.vmem [shape: bf16[9,8,4], index: 2, kind: input, shape index: {}]   ;;  %s3432_s3 = inlined_call_operand.vmem [shape: f32[8,1], index: 3, kind: input, shape index: {}]   ;;  %s3433_s4 = inlined_call_operand.vmem [shape: f32[8,1], index: 4, kind: input, shape index: {}]   ;;  %s3434_s5 = inlined_call_operand.vmem [shape: bf16[9,8,8], index: 5, kind: input, shape index: {}]   ;;  %s3435_s6 = inlined_call_operand.vmem [shape: f32[8,1], index: 6, kind: input, shape index: {}]   ;;  %s3436_s7 = inlined_call_operand.vmem [shape: f32[8,1], index: 7, kind: input, shape index: {}]   ;;  %s3437_s8 = inlined_call_operand.hbm [shape: f32[591,128], index: 8, kind: input, shape index: {}]   ;;  %s3438_s9 = inlined_call_operand.hbm [shape: f32[1,8,128], index: 9, kind: output, shape index: {}]  }
   0x1   :  { %15 = vsyncpa [#allocation4], 0  ;;  %s36_s11 = sshll.u32 %s3437_s8, 4  ;;  %s2750_s12 = smov [#allocation2]   ;;  %s37_s11 = int_to_ptr.hbm [resolvable:$true] %s36_s11 }
   0x2   :  { %s38_s13 = sshll.u32 %s2750_s12, 4  ;;  %s2751_s14 = smov 128   ;;  %s39_s13 = int_to_ptr.vmem [resolvable:$true] %s38_s13 }
   0x3   :  { %s2752_s15 = smov 8  }
   0x4   :  { %44 = dma.hbm_to_vmem [thread:$0]  %s37_s11, 9472, %s39_s13, [#allocation3], %s2751_s14, %s2751_s14, %s2752_s15  }
   0x5   :  { %2746 = dma.done.wait [#allocation3], 9472  }
   0x6   :  { %2747 = vsyncadd [#allocation3], 4294957824  ;;  %v2819_v0 = vld [vmem:[%s3429_s0] sm:$0xff]  ;;  %v2824_v1 = vld [vmem:[%s3429_s0 + $0x8] sm:$0xf]  ;;  %s2753_s8 = smov 127  }
   0x7   :  { %56 = vst [vmem:[#allocation1] ss:$4 sm:$0xff] %v2819_v0  ;;  %s2754_s0 = smov 126   ;;  %s2755_s20 = smov 110   ;;  %vm84_vm0 = vcmask 1039360   ;;  %vm94_vm1 = vcmask 1041408  }
   0x8   :  { %59 = vst [vmem:[#allocation1 + $0x20] ss:$4 sm:$0xff] %v2824_v1  ;;  %s2756_s21 = smov 109   ;;  %s2757_s22 = smov 108   ;;  %v2550_v59 = vld [vmem:[%s3431_s2 + $0x4] sm:$0xf] }
   0x9   :  { %s2758_s23 = smov 92   ;;  %vm90_vm2 = vcmask 31744   ;;  %s2759_s26 = smov 91   ;;  %vm322_vm3 = vcmask 1031168   ;;  %vm462_vm4 = vcmask 900096   ;;  %vm602_vm5 = vcmask 891904  }
   0xa   :  { %s2760_s29 = smov 90   ;;  %vm742_vm6 = vcmask 883712   ;;  %vm882_vm7 = vcmask 752640   ;;  %vm1022_vm8 = vcmask 744448   ;;  %vm1162_vm9 = vcmask 736256  }
   0xb   :  { %vm1360_vm10 = vcmask 1043456   ;;  %vm1356_vm11 = vcmask 64512   ;;  %vm2428_vm12 = vcmask 1046528   ;;  %vm2424_vm13 = vcmask 646144  }
   0xe   :  { %v64_v2 = vld.sshfl [vmem:[#allocation1 + $0x10] sm:$0xff pattern:$0x73625140]  ;;  %v60_v3 = vld.sshfl [vmem:[#allocation1] sm:$0xff pattern:$0x73625140] }
   0xf   :  { %76 = vrot.lane.b32.xlu1 %v64_v2, %s2753_s8  ;;  %72 = vrot.lane.b32.xlu0 %v60_v3, %s2753_s8  ;;  %v66_v4 = vld.sshfl [vmem:[#allocation1 + $0x18] sm:$0xff pattern:$0x73625140]  ;;  %v62_v5 = vld.sshfl [vmem:[#allocation1 + $0x8] sm:$0xff pattern:$0x73625140] }
  0x10   :  { %191 = vst [vmem:[#allocation1] ss:$4 sm:$0xff] %v2819_v0  ;;  %v68_v6 = vld.sshfl [vmem:[#allocation1 + $0x20] sm:$0xff pattern:$0x73625140] }
  0x11   :  { %80 = vrot.lane.b32.xlu2 %v68_v6, %s2753_s8  ;;  %v70_v7 = vld.sshfl [vmem:[#allocation1 + $0x28] sm:$0xff pattern:$0x73625140] }
  0x12   :  { %193 = vst [vmem:[#allocation1 + $0x20] ss:$4 sm:$0xff] %v2824_v1 }
  0x17   :  { %78 = vrot.lane.b32.xlu1 %v66_v4, %s2753_s8  ;;  %74 = vrot.lane.b32.xlu0 %v62_v5, %s2753_s8  ;;  %v2835_v8 = vld.sshfl [vmem:[#allocation1] sm:$0xff pattern:$0x73625140]  ;;  %v2837_v9 = vld.sshfl [vmem:[#allocation1 + $0x8] sm:$0xff pattern:$0x73625140] }
  0x18   :  { %v2839_v10 = vld.sshfl [vmem:[#allocation1 + $0x10] sm:$0xff pattern:$0x73625140]  ;;  %v2841_v11 = vld.sshfl [vmem:[#allocation1 + $0x18] sm:$0xff pattern:$0x73625140] }
  0x19   :  { %295 = vst [vmem:[#allocation1] ss:$4 sm:$0xff] %v2819_v0  ;;  %82 = vrot.lane.b32.xlu2 %v70_v7, %s2753_s8  ;;  %v2845_v12 = vld.sshfl [vmem:[#allocation1 + $0x20] sm:$0xff pattern:$0x73625140]  ;;  %v203_v61 = vsel %vm94_vm1, %v2835_v8, 0 }
  0x1a   :  { %v2847_v13 = vld.sshfl [vmem:[#allocation1 + $0x28] sm:$0xff pattern:$0x73625140]  ;;  %v205_v62 = vsel %vm94_vm1, %v2837_v9, 0  ;;  %v207_v63 = vsel %vm94_vm1, %v2839_v10, 0  ;;  %v209_v2 = vsel %vm94_vm1, %v2841_v11, 0 }
  0x1b   :  { %297 = vst [vmem:[#allocation1 + $0x20] ss:$4 sm:$0xff] %v2824_v1  ;;  %v211_v3 = vsel %vm94_vm1, %v2845_v12, 0  ;;  %v213_v4 = vsel %vm94_vm1, %v2847_v13, 0 }
  0x20   :  { %v300_v14 = vld.sshfl [vmem:[#allocation1 + $0x8] sm:$0xff pattern:$0x73625140]  ;;  %v302_v15 = vld.sshfl [vmem:[#allocation1 + $0x10] sm:$0xff pattern:$0x73625140] }
  0x21   :  { %312 = vrot.lane.b32.xlu1 %v300_v14, %s2754_s0  ;;  %v298_v16 = vld.sshfl [vmem:[#allocation1] sm:$0xff pattern:$0x73625140]  ;;  %v304_v17 = vld.sshfl [vmem:[#allocation1 + $0x18] sm:$0xff pattern:$0x73625140]  ;;  %314 = vrot.lane.b32.xlu2 %v302_v15, %s2754_s0 }
  0x22   :  { %310 = vrot.lane.b32.xlu0 %v298_v16, %s2754_s0  ;;  %435 = vst [vmem:[#allocation1] ss:$4 sm:$0xff] %v2819_v0  ;;  %v306_v18 = vld.sshfl [vmem:[#allocation1 + $0x20] sm:$0xff pattern:$0x73625140] }
  0x23   :  { %v308_v19 = vld.sshfl [vmem:[#allocation1 + $0x28] sm:$0xff pattern:$0x73625140]  ;;  %v52_v15 = vld [vmem:[%s3431_s2] sm:$0xf] }
  0x24   :  { %437 = vst [vmem:[#allocation1 + $0x20] ss:$4 sm:$0xff] %v2824_v1 }
  0x29   :  { %318 = vrot.lane.b32.xlu1 %v306_v18, %s2754_s0  ;;  %320 = vrot.lane.b32.xlu2 %v308_v19, %s2754_s0  ;;  %v438_v20 = vld.sshfl [vmem:[#allocation1] sm:$0xff pattern:$0x73625140]  ;;  %v440_v21 = vld.sshfl [vmem:[#allocation1 + $0x8] sm:$0xff pattern:$0x73625140] }
  0x2a   :  { %316 = vrot.lane.b32.xlu0 %v304_v17, %s2754_s0  ;;  %v442_v22 = vld.sshfl [vmem:[#allocation1 + $0x10] sm:$0xff pattern:$0x73625140]  ;;  %v444_v25 = vld.sshfl [vmem:[#allocation1 + $0x18] sm:$0xff pattern:$0x73625140] }
  0x2b   :  { %v448_v23 = vld.sshfl [vmem:[#allocation1 + $0x28] sm:$0xff pattern:$0x73625140]  ;;  %v446_v24 = vld.sshfl [vmem:[#allocation1 + $0x20] sm:$0xff pattern:$0x73625140] }
  0x2c   :  { %577 = vst [vmem:[#allocation1 + $0x20] ss:$4 sm:$0xff] %v2824_v1 }
  0x2d   :  { %575 = vst [vmem:[#allocation1] ss:$4 sm:$0xff] %v2819_v0 }
  0x31   :  { %452 = vrot.lane.b32.xlu1 %v440_v21, %s2755_s20  ;;  %454 = vrot.lane.b32.xlu2 %v442_v22, %s2755_s20 }
  0x32   :  { %450 = vrot.lane.b32.xlu0 %v438_v20, %s2755_s20 }
  0x33   :  { %v586_v30 = vld.sshfl [vmem:[#allocation1 + $0x20] sm:$0xff pattern:$0x73625140]  ;;  %v588_v34 = vld.sshfl [vmem:[#allocation1 + $0x28] sm:$0xff pattern:$0x73625140] }
  0x34   :  { %v582_v26 = vld.sshfl [vmem:[#allocation1 + $0x10] sm:$0xff pattern:$0x73625140]  ;;  %v580_v27 = vld.sshfl [vmem:[#allocation1 + $0x8] sm:$0xff pattern:$0x73625140] }
  0x35   :  { %v578_v28 = vld.sshfl [vmem:[#allocation1] sm:$0xff pattern:$0x73625140]  ;;  %v584_v29 = vld.sshfl [vmem:[#allocation1 + $0x18] sm:$0xff pattern:$0x73625140] }
  0x36   :  { %715 = vst [vmem:[#allocation1] ss:$4 sm:$0xff] %v2819_v0 }
  0x37   :  { %717 = vst [vmem:[#allocation1 + $0x20] ss:$4 sm:$0xff] %v2824_v1 }
  0x39   :  { %458 = vrot.lane.b32.xlu1 %v446_v24, %s2755_s20  ;;  %460 = vrot.lane.b32.xlu2 %v448_v23, %s2755_s20 }
  0x3a   :  { %456 = vrot.lane.b32.xlu0 %v444_v25, %s2755_s20 }
  0x3d   :  { %v718_v31 = vld.sshfl [vmem:[#allocation1] sm:$0xff pattern:$0x73625140]  ;;  %v720_v32 = vld.sshfl [vmem:[#allocation1 + $0x8] sm:$0xff pattern:$0x73625140] }
  0x3e   :  { %v724_v33 = vld.sshfl [vmem:[#allocation1 + $0x18] sm:$0xff pattern:$0x73625140]  ;;  %v726_v35 = vld.sshfl [vmem:[#allocation1 + $0x20] sm:$0xff pattern:$0x73625140] }
  0x3f   :  { %v728_v36 = vld.sshfl [vmem:[#allocation1 + $0x28] sm:$0xff pattern:$0x73625140]  ;;  %v722_v37 = vld.sshfl [vmem:[#allocation1 + $0x10] sm:$0xff pattern:$0x73625140] }
  0x40   :  { %857 = vst [vmem:[#allocation1 + $0x20] ss:$4 sm:$0xff] %v2824_v1 }
  0x41   :  { %592 = vrot.lane.b32.xlu1 %v580_v27, %s2756_s21  ;;  %594 = vrot.lane.b32.xlu2 %v582_v26, %s2756_s21  ;;  %855 = vst [vmem:[#allocation1] ss:$4 sm:$0xff] %v2819_v0 }
  0x42   :  { %590 = vrot.lane.b32.xlu0 %v578_v28, %s2756_s21 }
  0x47   :  { %v866_v45 = vld.sshfl [vmem:[#allocation1 + $0x20] sm:$0xff pattern:$0x73625140]  ;;  %v868_v22 = vld.sshfl [vmem:[#allocation1 + $0x28] sm:$0xff pattern:$0x73625140] }
  0x48   :  { %v860_v39 = vld.sshfl [vmem:[#allocation1 + $0x8] sm:$0xff pattern:$0x73625140]  ;;  %v858_v40 = vld.sshfl [vmem:[#allocation1] sm:$0xff pattern:$0x73625140] }
  0x49   :  { %598 = vrot.lane.b32.xlu1 %v586_v30, %s2756_s21  ;;  %600 = vrot.lane.b32.xlu2 %v588_v34, %s2756_s21  ;;  %v864_v46 = vld.sshfl [vmem:[#allocation1 + $0x18] sm:$0xff pattern:$0x73625140]  ;;  %v862_v60 = vld.sshfl [vmem:[#allocation1 + $0x10] sm:$0xff pattern:$0x73625140] }
  0x4a   :  { %596 = vrot.lane.b32.xlu0 %v584_v29, %s2756_s21  ;;  %995 = vst [vmem:[#allocation1] ss:$4 sm:$0xff] %v2819_v0 }
  0x4b   :  { %997 = vst [vmem:[#allocation1 + $0x20] ss:$4 sm:$0xff] %v2824_v1 }
  0x51   :  { %732 = vrot.lane.b32.xlu1 %v720_v32, %s2757_s22  ;;  %734 = vrot.lane.b32.xlu2 %v722_v37, %s2757_s22  ;;  %v998_v7 = vld.sshfl [vmem:[#allocation1] sm:$0xff pattern:$0x73625140]  ;;  %v1000_v8 = vld.sshfl [vmem:[#allocation1 + $0x8] sm:$0xff pattern:$0x73625140] }
  0x52   :  { %730 = vrot.lane.b32.xlu0 %v718_v31, %s2757_s22  ;;  %v1004_v10 = vld.sshfl [vmem:[#allocation1 + $0x18] sm:$0xff pattern:$0x73625140]  ;;  %v1008_v24 = vld.sshfl [vmem:[#allocation1 + $0x28] sm:$0xff pattern:$0x73625140] }
  0x53   :  { %v1006_v25 = vld.sshfl [vmem:[#allocation1 + $0x20] sm:$0xff pattern:$0x73625140]  ;;  %v1002_v26 = vld.sshfl [vmem:[#allocation1 + $0x10] sm:$0xff pattern:$0x73625140] }
  0x54   :  { %1137 = vst [vmem:[#allocation1 + $0x20] ss:$4 sm:$0xff] %v2824_v1 }
  0x55   :  { %1135 = vst [vmem:[#allocation1] ss:$4 sm:$0xff] %v2819_v0 }
  0x59   :  { %738 = vrot.lane.b32.xlu1 %v726_v35, %s2757_s22  ;;  %740 = vrot.lane.b32.xlu2 %v728_v36, %s2757_s22 }
  0x5a   :  { %736 = vrot.lane.b32.xlu0 %v724_v33, %s2757_s22 }
  0x5c   :  { %v1140_v35 = vld.sshfl [vmem:[#allocation1 + $0x8] sm:$0xff pattern:$0x73625140]  ;;  %v1138_v36 = vld.sshfl [vmem:[#allocation1] sm:$0xff pattern:$0x73625140] }
  0x61   :  { %872 = vrot.lane.b32.xlu1 %v860_v39, %s2758_s23  ;;  %874 = vrot.lane.b32.xlu2 %v862_v60, %s2758_s23  ;;  %v1146_v39 = vld.sshfl [vmem:[#allocation1 + $0x20] sm:$0xff pattern:$0x73625140]  ;;  %v2570_v60 = vld [vmem:[%s3431_s2 + $0xc] sm:$0xf] }
  0x62   :  { %870 = vrot.lane.b32.xlu0 %v858_v40, %s2758_s23  ;;  %v1144_v40 = vld.sshfl [vmem:[#allocation1 + $0x18] sm:$0xff pattern:$0x73625140] }
  0x69   :  { %878 = vrot.lane.b32.xlu1 %v866_v45, %s2758_s23  ;;  %880 = vrot.lane.b32.xlu2 %v868_v22, %s2758_s23 }
  0x6a   :  { %876 = vrot.lane.b32.xlu0 %v864_v46, %s2758_s23 }
  0x6b   :  { %v81_v38 = vpop.permute.xlu2 %80 }
  0x71   :  { %1012 = vrot.lane.b32.xlu1 %v1000_v8, %s2759_s26  ;;  %1014 = vrot.lane.b32.xlu2 %v1002_v26, %s2759_s26 }
  0x72   :  { %1010 = vrot.lane.b32.xlu0 %v998_v7, %s2759_s26 }
  0x73   :  { %v83_v43 = vpop.permute.xlu2 %82 }
  0x74   :  { %v89_v44 = vsel %vm84_vm0, %v81_v38, %v83_v43  ;;  %v111_v50 = vsel %vm94_vm1, %v83_v43, 0 }
  0x75   :  { %v108_v49 = vsel %vm94_vm1, %v89_v44, 0  ;;  %v2563_v44 = vld [vmem:[%s3431_s2 + $0x8] sm:$0xf] }
  0x79   :  { %1018 = vrot.lane.b32.xlu1 %v1006_v25, %s2759_s26  ;;  %1020 = vrot.lane.b32.xlu2 %v1008_v24, %s2759_s26 }
  0x7a   :  { %1016 = vrot.lane.b32.xlu0 %v1004_v10, %s2759_s26 }
  0x7b   :  { %v315_v9 = vpop.permute.xlu2 %314 }
  0x81   :  { %v77_v41 = vpop.permute.xlu1 %76  ;;  %v73_v42 = vpop.permute.xlu0 %72  ;;  %1152 = vrot.lane.b32.xlu1 %v1140_v35, %s2760_s29 }
  0x82   :  { %1150 = vrot.lane.b32.xlu0 %v1138_v36, %s2760_s29 }
  0x83   :  { %v321_v23 = vpop.permute.xlu2 %320 }
  0x84   :  { %v347_v34 = vsel %vm94_vm1, %v321_v23, 0 }
  0x89   :  { %v79_v47 = vpop.permute.xlu1 %78  ;;  %v75_v48 = vpop.permute.xlu0 %74  ;;  %1158 = vrot.lane.b32.xlu1 %v1146_v39, %s2760_s29 }
  0x8a   :  { %v85_v51 = vsel %vm84_vm0, %v73_v42, %v75_v48  ;;  %v86_v52 = vsel %vm84_vm0, %v75_v48, %v77_v41  ;;  %v87_v53 = vsel %vm84_vm0, %v77_v41, %v79_v47  ;;  %v88_v54 = vsel %vm84_vm0, %v79_v47, %v81_v38  ;;  %1156 = vrot.lane.b32.xlu0 %v1144_v40, %s2760_s29 }
  0x8b   :  { %v96_v55 = vsel %vm94_vm1, %v85_v51, 0  ;;  %v99_v56 = vsel %vm94_vm1, %v86_v52, 0  ;;  %v102_v57 = vsel %vm94_vm1, %v87_v53, 0  ;;  %v105_v58 = vsel %vm94_vm1, %v88_v54, 0  ;;  %v455_v27 = vpop.permute.xlu2 %454 }
  0x8c   :  { %120 = vmatpush.bf16.msra.mxu0 %v96_v55  ;;  %133 = vmatpush.bf16.msra.mxu1 %v99_v56  ;;  %v1142_v52 = vld.sshfl [vmem:[#allocation1 + $0x10] sm:$0xff pattern:$0x73625140] }
  0x8d   :  { %146 = vmatpush.bf16.msra.mxu2 %v102_v57  ;;  %159 = vmatpush.bf16.msra.mxu3 %v105_v58 }
  0x8e   :  { %1154 = vrot.lane.b32.xlu2 %v1142_v52, %s2760_s29 }
  0x8f   :  { %2551 = vmatmul.msk.bf16.vlgmr.msra.gmra.mxu0 %vm90_vm2, %v2550_v59  ;;  %2552 = vmatmul.msk.bf16.vlgmr.msra.gmra.mxu1 %vm90_vm2, %v2550_v59 }
  0x90   :  { %172 = vmatpush.bf16.msrb.mxu0 %v108_v49  ;;  %185 = vmatpush.bf16.msrb.mxu1 %v111_v50 }
  0x91   :  { %2553 = vmatmul.msk.bf16.vlgmr.msra.gmra.mxu2 %vm90_vm2, %v2550_v59  ;;  %2554 = vmatmul.msk.bf16.vlgmr.msra.gmra.mxu3 %vm90_vm2, %v2550_v59 }
  0x92   :  { %222 = vmatpush.bf16.msrb.mxu2 %v203_v61  ;;  %235 = vmatpush.bf16.msrb.mxu3 %v205_v62 }
  0x93   :  { %v313_v5 = vpop.permute.xlu1 %312  ;;  %v461_v41 = vpop.permute.xlu2 %460 }
  0x94   :  { %248 = vmatpush.bf16.msra.mxu0 %v207_v63  ;;  %261 = vmatpush.bf16.msra.mxu1 %v209_v2  ;;  %v311_v6 = vpop.permute.xlu0 %310  ;;  %v324_v12 = vsel %vm322_vm3, %v313_v5, %v315_v9  ;;  %v487_v48 = vsel %vm94_vm1, %v461_v41, 0 }
  0x95   :  { %v323_v11 = vsel %vm322_vm3, %v311_v6, %v313_v5  ;;  %v335_v19 = vsel %vm94_vm1, %v324_v12, 0 }
  0x96   :  { %274 = vmatpush.bf16.msra.mxu2 %v211_v3  ;;  %287 = vmatpush.bf16.msra.mxu3 %v213_v4  ;;  %v332_v18 = vsel %vm94_vm1, %v323_v11, 0  ;;  %v1148_v3 = vld.sshfl [vmem:[#allocation1 + $0x28] sm:$0xff pattern:$0x73625140] }
  0x97   :  { %1160 = vrot.lane.b32.xlu2 %v1148_v3, %s2760_s29 }
  0x9b   :  { %v319_v13 = vpop.permute.xlu1 %318  ;;  %v595_v53 = vpop.permute.xlu2 %594 }
  0x9c   :  { %v317_v14 = vpop.permute.xlu0 %316  ;;  %v327_v29 = vsel %vm322_vm3, %v319_v13, %v321_v23 }
  0x9d   :  { %v325_v16 = vsel %vm322_vm3, %v315_v9, %v317_v14  ;;  %v326_v17 = vsel %vm322_vm3, %v317_v14, %v319_v13  ;;  %v344_v33 = vsel %vm94_vm1, %v327_v29, 0 }
  0x9e   :  { %v338_v20 = vsel %vm94_vm1, %v325_v16, 0  ;;  %v341_v21 = vsel %vm94_vm1, %v326_v17, 0 }
  0x9f   :  { %2555 = vmatmul.msk.bf16.vlgmr.msrb.gmra.mxu0 %vm90_vm2, %v2550_v59  ;;  %2556 = vmatmul.msk.bf16.vlgmr.msrb.gmra.mxu1 %vm90_vm2, %v2550_v59 }
  0xa0   :  { %369 = vmatpush.bf16.msrb.mxu1 %v335_v19  ;;  %356 = vmatpush.bf16.msrb.mxu0 %v332_v18 }
  0xa1   :  { %2558 = vmatmul.msk.bf16.vlgmr.msrb.gmra.mxu3 %vm90_vm2, %v52_v15  ;;  %2557 = vmatmul.msk.bf16.vlgmr.msrb.gmra.mxu2 %vm90_vm2, %v52_v15 }
  0xa2   :  { %395 = vmatpush.bf16.msrb.mxu3 %v341_v21  ;;  %382 = vmatpush.bf16.msrb.mxu2 %v338_v20  ;;  %v2577_v20 = vld [vmem:[%s3431_s2 + $0x10] sm:$0xf] }
  0xa3   :  { %v453_v28 = vpop.permute.xlu1 %452  ;;  %v601_v4 = vpop.permute.xlu2 %600 }
  0xa4   :  { %v451_v30 = vpop.permute.xlu0 %450  ;;  %v464_v32 = vsel %vm462_vm4, %v453_v28, %v455_v27  ;;  %v627_v12 = vsel %vm94_vm1, %v601_v4, 0 }
  0xa5   :  { %v463_v31 = vsel %vm462_vm4, %v451_v30, %v453_v28  ;;  %v475_v0 = vsel %vm94_vm1, %v464_v32, 0 }
  0xa6   :  { %v472_v1 = vsel %vm94_vm1, %v463_v31, 0 }
  0xab   :  { %v459_v37 = vpop.permute.xlu1 %458  ;;  %v735_v5 = vpop.permute.xlu2 %734 }
  0xac   :  { %v457_v38 = vpop.permute.xlu0 %456  ;;  %v467_v45 = vsel %vm462_vm4, %v459_v37, %v461_v41 }
  0xad   :  { %v465_v42 = vsel %vm462_vm4, %v455_v27, %v457_v38  ;;  %v466_v43 = vsel %vm462_vm4, %v457_v38, %v459_v37  ;;  %v484_v49 = vsel %vm94_vm1, %v467_v45, 0 }
  0xae   :  { %v478_v46 = vsel %vm94_vm1, %v465_v42, 0  ;;  %v481_v47 = vsel %vm94_vm1, %v466_v43, 0 }
  0xaf   :  { %2559 = vmatmul.msk.bf16.vlgmr.msra.gmra.mxu0 %vm90_vm2, %v52_v15  ;;  %2560 = vmatmul.msk.bf16.vlgmr.msra.gmra.mxu1 %vm90_vm2, %v52_v15 }
  0xb0   :  { %408 = vmatpush.bf16.msra.mxu0 %v344_v33  ;;  %421 = vmatpush.bf16.msra.mxu1 %v347_v34 }
  0xb1   :  { %2562 = vmatmul.msk.bf16.vlgmr.msra.gmra.mxu3 %vm90_vm2, %v52_v15  ;;  %2561 = vmatmul.msk.bf16.vlgmr.msra.gmra.mxu2 %vm90_vm2, %v52_v15 }
  0xb2   :  { %496 = vmatpush.bf16.msra.mxu2 %v472_v1  ;;  %509 = vmatpush.bf16.msra.mxu3 %v475_v0  ;;  %v2584_v1 = vld [vmem:[%s3431_s2 + $0x14] sm:$0xf] }
  0xb3   :  { %v593_v50 = vpop.permute.xlu1 %592  ;;  %v741_v16 = vpop.permute.xlu2 %740 }
  0xb4   :  { %v591_v51 = vpop.permute.xlu0 %590  ;;  %v604_v57 = vsel %vm602_vm5, %v593_v50, %v595_v53  ;;  %v767_v24 = vsel %vm94_vm1, %v741_v16, 0 }
  0xb5   :  { %v603_v56 = vsel %vm602_vm5, %v591_v51, %v593_v50  ;;  %v615_v62 = vsel %vm94_vm1, %v604_v57, 0 }
  0xb6   :  { %v612_v61 = vsel %vm94_vm1, %v603_v56, 0 }
  0xbb   :  { %v599_v54 = vpop.permute.xlu1 %598  ;;  %v875_v28 = vpop.permute.xlu2 %874 }
  0xbc   :  { %v597_v55 = vpop.permute.xlu0 %596  ;;  %v607_v7 = vsel %vm602_vm5, %v599_v54, %v601_v4 }
  0xbd   :  { %v605_v58 = vsel %vm602_vm5, %v595_v53, %v597_v55  ;;  %v606_v59 = vsel %vm602_vm5, %v597_v55, %v599_v54  ;;  %v624_v11 = vsel %vm94_vm1, %v607_v7, 0 }
  0xbe   :  { %v618_v63 = vsel %vm94_vm1, %v605_v58, 0  ;;  %v621_v2 = vsel %vm94_vm1, %v606_v59, 0 }
  0xbf   :  { %2564 = vmatmul.msk.bf16.vlgmr.msrb.gmra.mxu0 %vm90_vm2, %v2563_v44  ;;  %2565 = vmatmul.msk.bf16.vlgmr.msrb.gmra.mxu1 %vm90_vm2, %v2563_v44 }
  0xc0   :  { %522 = vmatpush.bf16.msrb.mxu0 %v478_v46  ;;  %535 = vmatpush.bf16.msrb.mxu1 %v481_v47 }
  0xc1   :  { %2566 = vmatmul.msk.bf16.vlgmr.msrb.gmra.mxu2 %vm90_vm2, %v2563_v44  ;;  %2567 = vmatmul.msk.bf16.vlgmr.msrb.gmra.mxu3 %vm90_vm2, %v2563_v44 }
  0xc2   :  { %548 = vmatpush.bf16.msrb.mxu2 %v484_v49  ;;  %561 = vmatpush.bf16.msrb.mxu3 %v487_v48 }
  0xc3   :  { %v733_v6 = vpop.permute.xlu1 %732  ;;  %v881_v38 = vpop.permute.xlu2 %880 }
  0xc4   :  { %v731_v8 = vpop.permute.xlu0 %730  ;;  %v744_v10 = vsel %vm742_vm6, %v733_v6, %v735_v5  ;;  %v907_v48 = vsel %vm94_vm1, %v881_v38, 0 }
  0xc5   :  { %v743_v9 = vsel %vm742_vm6, %v731_v8, %v733_v6  ;;  %v755_v14 = vsel %vm94_vm1, %v744_v10, 0 }
  0xc6   :  { %v752_v13 = vsel %vm94_vm1, %v743_v9, 0 }
  0xcb   :  { %v739_v17 = vpop.permute.xlu1 %738  ;;  %v1015_v39 = vpop.permute.xlu2 %1014 }
  0xcc   :  { %v737_v15 = vpop.permute.xlu0 %736  ;;  %v747_v21 = vsel %vm742_vm6, %v739_v17, %v741_v16 }
  0xcd   :  { %v745_v18 = vsel %vm742_vm6, %v735_v5, %v737_v15  ;;  %v746_v19 = vsel %vm742_vm6, %v737_v15, %v739_v17  ;;  %v764_v25 = vsel %vm94_vm1, %v747_v21, 0 }
  0xce   :  { %v758_v22 = vsel %vm94_vm1, %v745_v18, 0  ;;  %v761_v23 = vsel %vm94_vm1, %v746_v19, 0 }
  0xcf   :  { %2568 = vmatmul.msk.bf16.vlgmr.msra.gmra.mxu0 %vm90_vm2, %v2563_v44  ;;  %2569 = vmatmul.msk.bf16.vlgmr.msra.gmra.mxu1 %vm90_vm2, %v2563_v44 }
  0xd0   :  { %649 = vmatpush.bf16.msra.mxu1 %v615_v62  ;;  %636 = vmatpush.bf16.msra.mxu0 %v612_v61 }
  0xd1   :  { %2572 = vmatmul.msk.bf16.vlgmr.msra.gmra.mxu3 %vm90_vm2, %v2570_v60  ;;  %2571 = vmatmul.msk.bf16.vlgmr.msra.gmra.mxu2 %vm90_vm2, %v2570_v60 }
  0xd2   :  { %675 = vmatpush.bf16.msra.mxu3 %v621_v2  ;;  %662 = vmatpush.bf16.msra.mxu2 %v618_v63  ;;  %v2591_v2 = vld [vmem:[%s3431_s2 + $0x18] sm:$0xf] }
  0xd3   :  { %v873_v26 = vpop.permute.xlu1 %872  ;;  %v1021_v56 = vpop.permute.xlu2 %1020 }
  0xd4   :  { %v871_v27 = vpop.permute.xlu0 %870  ;;  %v884_v30 = vsel %vm882_vm7, %v873_v26, %v875_v28  ;;  %v1047_v6 = vsel %vm94_vm1, %v1021_v56, 0 }
  0xd5   :  { %v883_v29 = vsel %vm882_vm7, %v871_v27, %v873_v26  ;;  %v895_v35 = vsel %vm94_vm1, %v884_v30, 0 }
  0xd6   :  { %v892_v0 = vsel %vm94_vm1, %v883_v29, 0 }
  0xdb   :  { %v879_v31 = vpop.permute.xlu1 %878 }
  0xdc   :  { %v877_v32 = vpop.permute.xlu0 %876  ;;  %v887_v41 = vsel %vm882_vm7, %v879_v31, %v881_v38 }
  0xdd   :  { %v885_v33 = vsel %vm882_vm7, %v875_v28, %v877_v32  ;;  %v886_v34 = vsel %vm882_vm7, %v877_v32, %v879_v31  ;;  %v904_v47 = vsel %vm94_vm1, %v887_v41, 0 }
  0xde   :  { %v898_v36 = vsel %vm94_vm1, %v885_v33, 0  ;;  %v901_v37 = vsel %vm94_vm1, %v886_v34, 0 }
  0xdf   :  { %2573 = vmatmul.msk.bf16.vlgmr.msrb.gmra.mxu0 %vm90_vm2, %v2570_v60  ;;  %2574 = vmatmul.msk.bf16.vlgmr.msrb.gmra.mxu1 %vm90_vm2, %v2570_v60 }
  0xe0   :  { %688 = vmatpush.bf16.msrb.mxu0 %v624_v11  ;;  %701 = vmatpush.bf16.msrb.mxu1 %v627_v12 }
  0xe1   :  { %2576 = vmatmul.msk.bf16.vlgmr.msrb.gmra.mxu3 %vm90_vm2, %v2570_v60  ;;  %2575 = vmatmul.msk.bf16.vlgmr.msrb.gmra.mxu2 %vm90_vm2, %v2570_v60 }
  0xe2   :  { %776 = vmatpush.bf16.msrb.mxu2 %v752_v13  ;;  %789 = vmatpush.bf16.msrb.mxu3 %v755_v14 }
  0xe3   :  { %v1013_v40 = vpop.permute.xlu1 %1012 }
  0xe4   :  { %v1011_v42 = vpop.permute.xlu0 %1010  ;;  %v1024_v46 = vsel %vm1022_vm8, %v1013_v40, %v1015_v39 }
  0xe5   :  { %v1023_v45 = vsel %vm1022_vm8, %v1011_v42, %v1013_v40  ;;  %v1035_v50 = vsel %vm94_vm1, %v1024_v46, 0 }
  0xe6   :  { %v1032_v49 = vsel %vm94_vm1, %v1023_v45, 0  ;;  %v1273_v45 = vld [vmem:[%s3432_s3] sm:$0xff]  ;;  %s2540_s3 = sshll.u32 %s3438_s9, 4  ;;  %s2541_s3 = int_to_ptr.hbm [resolvable:$true] %s2540_s3 }
  0xe8   :  { %v1155_v16 = vpop.permute.xlu2 %1154 }
  0xeb   :  { %v1019_v57 = vpop.permute.xlu1 %1018 }
  0xec   :  { %v1017_v55 = vpop.permute.xlu0 %1016  ;;  %v1027_v3 = vsel %vm1022_vm8, %v1019_v57, %v1021_v56 }
  0xed   :  { %v1025_v60 = vsel %vm1022_vm8, %v1015_v39, %v1017_v55  ;;  %v1026_v61 = vsel %vm1022_vm8, %v1017_v55, %v1019_v57  ;;  %v1044_v7 = vsel %vm94_vm1, %v1027_v3, 0 }
  0xee   :  { %v1038_v4 = vsel %vm94_vm1, %v1025_v60, 0  ;;  %v1041_v5 = vsel %vm94_vm1, %v1026_v61, 0  ;;  %v2605_v61 = vld [vmem:[%s3431_s2 + $0x20] sm:$0xf] }
  0xef   :  { %2578 = vmatmul.msk.bf16.vlgmr.msra.gmra.mxu0 %vm90_vm2, %v2577_v20  ;;  %2579 = vmatmul.msk.bf16.vlgmr.msra.gmra.mxu1 %vm90_vm2, %v2577_v20 }
  0xf0   :  { %802 = vmatpush.bf16.msra.mxu0 %v758_v22  ;;  %815 = vmatpush.bf16.msra.mxu1 %v761_v23 }
  0xf1   :  { %2580 = vmatmul.msk.bf16.vlgmr.msra.gmra.mxu2 %vm90_vm2, %v2577_v20  ;;  %2581 = vmatmul.msk.bf16.vlgmr.msra.gmra.mxu3 %vm90_vm2, %v2577_v20  ;;  %v1161_v38 = vpop.permute.xlu2 %1160 }
  0xf2   :  { %828 = vmatpush.bf16.msra.mxu2 %v764_v25  ;;  %841 = vmatpush.bf16.msra.mxu3 %v767_v24  ;;  %v2598_v25 = vld [vmem:[%s3431_s2 + $0x1c] sm:$0xf] }
  0xf3   :  { %v1153_v14 = vpop.permute.xlu1 %1152 }
  0xf4   :  { %v1151_v15 = vpop.permute.xlu0 %1150 }
  0xf5   :  { %v1163_v19 = vsel %vm1162_vm9, %v1151_v15, %v1153_v14 }
  0xf6   :  { %v1172_v28 = vsel %vm94_vm1, %v1163_v19, 0 }
  0xfb   :  { %v1159_v26 = vpop.permute.xlu1 %1158 }
  0xfc   :  { %v1157_v27 = vpop.permute.xlu0 %1156  ;;  %v1167_v41 = vsel %vm1162_vm9, %v1159_v26, %v1161_v38 }
  0xfd   :  { %v1165_v30 = vsel %vm1162_vm9, %v1155_v16, %v1157_v27  ;;  %v1166_v31 = vsel %vm1162_vm9, %v1157_v27, %v1159_v26 }
  0xfe   :  { %v1178_v32 = vsel %vm94_vm1, %v1165_v30, 0  ;;  %v1181_v33 = vsel %vm94_vm1, %v1166_v31, 0 }
  0xff   :  { %2582 = vmatmul.msk.bf16.vlgmr.msrb.gmra.mxu0 %vm90_vm2, %v2577_v20  ;;  %2583 = vmatmul.msk.bf16.vlgmr.msrb.gmra.mxu1 %vm90_vm2, %v2577_v20  ;;  %v1164_v20 = vsel %vm1162_vm9, %v1153_v14, %v1155_v16 }
 0x100   :  { %929 = vmatpush.bf16.msrb.mxu1 %v895_v35  ;;  %916 = vmatpush.bf16.msrb.mxu0 %v892_v0  ;;  %v1175_v29 = vsel %vm94_vm1, %v1164_v20, 0 }
 0x101   :  { %2585 = vmatmul.msk.bf16.vlgmr.msrb.gmra.mxu2 %vm90_vm2, %v2584_v1  ;;  %2586 = vmatmul.msk.bf16.vlgmr.msrb.gmra.mxu3 %vm90_vm2, %v2584_v1 }
 0x102   :  { %942 = vmatpush.bf16.msrb.mxu2 %v898_v36  ;;  %955 = vmatpush.bf16.msrb.mxu3 %v901_v37 }
 0x10c   :  { %v122_v43 = vpop.f32.mrf.mxu0  ;;  %v135_v44 = vpop.f32.mrf.mxu1 }
 0x10f   :  { %2587 = vmatmul.msk.bf16.vlgmr.msra.gmra.mxu0 %vm90_vm2, %v2584_v1  ;;  %2588 = vmatmul.msk.bf16.vlgmr.msra.gmra.mxu1 %vm90_vm2, %v2584_v1 }
 0x110   :  { %968 = vmatpush.bf16.msra.mxu0 %v904_v47  ;;  %981 = vmatpush.bf16.msra.mxu1 %v907_v48  ;;  %v1285_v48 = vld [vmem:[%s3433_s4] sm:$0xff] }
 0x111   :  { %2589 = vmatmul.msk.bf16.vlgmr.msra.gmra.mxu2 %vm90_vm2, %v2584_v1  ;;  %2590 = vmatmul.msk.bf16.vlgmr.msra.gmra.mxu3 %vm90_vm2, %v2584_v1 }
 0x112   :  { %1056 = vmatpush.bf16.msra.mxu2 %v1032_v49  ;;  %1069 = vmatpush.bf16.msra.mxu3 %v1035_v50  ;;  %v1184_v49 = vsel %vm94_vm1, %v1167_v41, 0  ;;  %v1187_v50 = vsel %vm94_vm1, %v1161_v38, 0 }
 0x114   :  { %v148_v51 = vpop.f32.mrf.mxu2  ;;  %v161_v52 = vpop.f32.mrf.mxu3 }
 0x115   :  { %v124_v53 = vpop.f32.mrf.mxu0  ;;  %v137_v54 = vpop.f32.mrf.mxu1 }
 0x11c   :  { %v150_v58 = vpop.f32.mrf.mxu2  ;;  %v163_v59 = vpop.f32.mrf.mxu3 }
 0x11d   :  { %v174_v62 = vpop.f32.mrf.mxu0  ;;  %v187_v63 = vpop.f32.mrf.mxu1 }
 0x11f   :  { %2592 = vmatmul.msk.bf16.vlgmr.msrb.gmra.mxu0 %vm90_vm2, %v2591_v2  ;;  %2593 = vmatmul.msk.bf16.vlgmr.msrb.gmra.mxu1 %vm90_vm2, %v2591_v2 }
 0x120   :  { %1082 = vmatpush.bf16.msrb.mxu0 %v1038_v4  ;;  %1095 = vmatpush.bf16.msrb.mxu1 %v1041_v5 }
 0x121   :  { %2594 = vmatmul.msk.bf16.vlgmr.msrb.gmra.mxu2 %vm90_vm2, %v2591_v2  ;;  %2595 = vmatmul.msk.bf16.vlgmr.msrb.gmra.mxu3 %vm90_vm2, %v2591_v2 }
 0x122   :  { %1108 = vmatpush.bf16.msrb.mxu2 %v1044_v7  ;;  %1121 = vmatpush.bf16.msrb.mxu3 %v1047_v6 }
 0x124   :  { %v224_v8 = vpop.f32.mrf.mxu2  ;;  %v237_v9 = vpop.f32.mrf.mxu3 }
 0x125   :  { %v225_v10 = vadd.f32 %v224_v8, %v122_v43  ;;  %v238_v11 = vadd.f32 %v237_v9, %v135_v44  ;;  %v176_v12 = vpop.f32.mrf.mxu0  ;;  %v189_v13 = vpop.f32.mrf.mxu1  ;;  %v2761_v44 = vmov 0  }
 0x126   :  { %2680 = vset.pattern.permute.xlu0 %v2761_v44  ;;  %2681 = vset.pattern.permute.xlu1 %v2761_v44 }
 0x127   :  { %1276 = vperm.xlu0 %2680, %v1273_v45   ;;  %2682 = vset.pattern.permute.xlu2 %v2761_v44 }
 0x128   :  { %1288 = vperm.xlu1 %2681, %v1285_v48  }
 0x12c   :  { %v226_v17 = vpop.f32.mrf.mxu2  ;;  %v239_v18 = vpop.f32.mrf.mxu3 }
 0x12d   :  { %v250_v21 = vpop.f32.mrf.mxu0  ;;  %v263_v22 = vpop.f32.mrf.mxu1 }
 0x12e   :  { %v251_v23 = vadd.f32 %v250_v21, %v148_v51  ;;  %v264_v24 = vadd.f32 %v263_v22, %v161_v52 }
 0x12f   :  { %2596 = vmatmul.msk.bf16.vlgmr.msra.gmra.mxu0 %vm90_vm2, %v2591_v2  ;;  %2597 = vmatmul.msk.bf16.vlgmr.msra.gmra.mxu1 %vm90_vm2, %v2591_v2 }
 0x130   :  { %1209 = vmatpush.bf16.msra.mxu1 %v1175_v29  ;;  %1196 = vmatpush.bf16.msra.mxu0 %v1172_v28 }
 0x131   :  { %2599 = vmatmul.msk.bf16.vlgmr.msra.gmra.mxu2 %vm90_vm2, %v2598_v25  ;;  %2600 = vmatmul.msk.bf16.vlgmr.msra.gmra.mxu3 %vm90_vm2, %v2598_v25 }
 0x132   :  { %1222 = vmatpush.bf16.msra.mxu2 %v1178_v32  ;;  %1235 = vmatpush.bf16.msra.mxu3 %v1181_v33 }
 0x134   :  { %v276_v34 = vpop.f32.mrf.mxu2  ;;  %v289_v1 = vpop.f32.mrf.mxu3 }
 0x135   :  { %v277_v0 = vadd.f32 %v276_v34, %v174_v62  ;;  %v290_v35 = vadd.f32 %v289_v1, %v187_v63  ;;  %v252_v36 = vpop.f32.mrf.mxu0  ;;  %v265_v37 = vpop.f32.mrf.mxu1 }
 0x13c   :  { %v278_v39 = vpop.f32.mrf.mxu2  ;;  %v291_v40 = vpop.f32.mrf.mxu3 }
 0x13d   :  { %v358_v42 = vpop.f32.mrf.mxu0  ;;  %v371_v43 = vpop.f32.mrf.mxu1 }
 0x13e   :  { %v427_v46 = vadd.f32 %v358_v42, %v225_v10  ;;  %v428_v47 = vadd.f32 %v371_v43, %v238_v11 }
 0x13f   :  { %2601 = vmatmul.msk.bf16.vlgmr.msrb.gmra.mxu0 %vm90_vm2, %v2598_v25  ;;  %2602 = vmatmul.msk.bf16.vlgmr.msrb.gmra.mxu1 %vm90_vm2, %v2598_v25 }
 0x140   :  { %1248 = vmatpush.bf16.msrb.mxu0 %v1184_v49  ;;  %1261 = vmatpush.bf16.msrb.mxu1 %v1187_v50 }
 0x141   :  { %2603 = vmatmul.msk.bf16.vlgmr.msrb.gmra.mxu2 %vm90_vm2, %v2598_v25  ;;  %2604 = vmatmul.msk.bf16.vlgmr.msrb.gmra.mxu3 %vm90_vm2, %v2598_v25 }
 0x144   :  { %v384_v51 = vpop.f32.mrf.mxu2  ;;  %v397_v52 = vpop.f32.mrf.mxu3 }
 0x145   :  { %v429_v53 = vadd.f32 %v384_v51, %v251_v23  ;;  %v430_v54 = vadd.f32 %v397_v52, %v264_v24  ;;  %v360_v55 = vpop.f32.mrf.mxu0  ;;  %v373_v56 = vpop.f32.mrf.mxu1 }
 0x14c   :  { %v386_v57 = vpop.f32.mrf.mxu2  ;;  %v399_v58 = vpop.f32.mrf.mxu3 }
 0x14d   :  { %v410_v59 = vpop.f32.mrf.mxu0  ;;  %v423_v60 = vpop.f32.mrf.mxu1 }
 0x14e   :  { %v431_v62 = vadd.f32 %v410_v59, %v277_v0  ;;  %v432_v63 = vadd.f32 %v423_v60, %v290_v35 }
 0x14f   :  { %2606 = vmatmul.msk.bf16.vlgmr.msra.gmra.mxu0 %vm90_vm2, %v2605_v61  ;;  %2607 = vmatmul.msk.bf16.vlgmr.msra.gmra.mxu1 %vm90_vm2, %v2605_v61 }
 0x151   :  { %2608 = vmatmul.msk.bf16.vlgmr.msra.gmra.mxu2 %vm90_vm2, %v2605_v61  ;;  %2609 = vmatmul.msk.bf16.vlgmr.msra.gmra.mxu3 %vm90_vm2, %v2605_v61 }
 0x154   :  { %v498_v2 = vpop.f32.mrf.mxu2  ;;  %v511_v3 = vpop.f32.mrf.mxu3 }
 0x155   :  { %v567_v4 = vadd.f32 %v498_v2, %v427_v46  ;;  %v568_v5 = vadd.f32 %v511_v3, %v428_v47  ;;  %v412_v6 = vpop.f32.mrf.mxu0  ;;  %v425_v7 = vpop.f32.mrf.mxu1 }
 0x15c   :  { %v500_v8 = vpop.f32.mrf.mxu2  ;;  %v513_v9 = vpop.f32.mrf.mxu3 }
 0x15d   :  { %v524_v10 = vpop.f32.mrf.mxu0  ;;  %v537_v11 = vpop.f32.mrf.mxu1 }
 0x15e   :  { %v569_v12 = vadd.f32 %v524_v10, %v429_v53  ;;  %v570_v13 = vadd.f32 %v537_v11, %v430_v54 }
 0x15f   :  { %2610 = vmatmul.msk.bf16.vlgmr.msrb.gmra.mxu0 %vm90_vm2, %v2605_v61  ;;  %2611 = vmatmul.msk.bf16.vlgmr.msrb.gmra.mxu1 %vm90_vm2, %v2605_v61 }
 0x164   :  { %v550_v14 = vpop.f32.mrf.mxu2  ;;  %v563_v15 = vpop.f32.mrf.mxu3 }
 0x165   :  { %v571_v16 = vadd.f32 %v550_v14, %v431_v62  ;;  %v572_v17 = vadd.f32 %v563_v15, %v432_v63  ;;  %v526_v18 = vpop.f32.mrf.mxu0  ;;  %v539_v19 = vpop.f32.mrf.mxu1 }
 0x16c   :  { %v552_v20 = vpop.f32.mrf.mxu2  ;;  %v565_v21 = vpop.f32.mrf.mxu3 }
 0x16d   :  { %v638_v22 = vpop.f32.mrf.mxu0  ;;  %v651_v23 = vpop.f32.mrf.mxu1 }
 0x16e   :  { %v707_v24 = vadd.f32 %v638_v22, %v567_v4  ;;  %v708_v25 = vadd.f32 %v651_v23, %v568_v5 }
 0x174   :  { %v664_v26 = vpop.f32.mrf.mxu2  ;;  %v677_v27 = vpop.f32.mrf.mxu3 }
 0x175   :  { %v709_v28 = vadd.f32 %v664_v26, %v569_v12  ;;  %v710_v29 = vadd.f32 %v677_v27, %v570_v13  ;;  %v640_v30 = vpop.f32.mrf.mxu0  ;;  %v653_v31 = vpop.f32.mrf.mxu1  ;;  %v3098_v27 = vld [vmem:[%s3430_s1] sm:$0x3f] }
 0x17c   :  { %v666_v32 = vpop.f32.mrf.mxu2  ;;  %v679_v33 = vpop.f32.mrf.mxu3 }
 0x17d   :  { %v690_v34 = vpop.f32.mrf.mxu0  ;;  %v703_v1 = vpop.f32.mrf.mxu1  ;;  %v1305_v33 = vperm.slane %v3098_v27, 0 }
 0x17e   :  { %v711_v0 = vadd.f32 %v690_v34, %v571_v16  ;;  %v712_v35 = vadd.f32 %v703_v1, %v572_v17  ;;  %v1306_v34 = vperm.slane %v3098_v27, 1 }
 0x184   :  { %v778_v36 = vpop.f32.mrf.mxu2  ;;  %v791_v37 = vpop.f32.mrf.mxu3 }
 0x185   :  { %v847_v38 = vadd.f32 %v778_v36, %v707_v24  ;;  %v848_v39 = vadd.f32 %v791_v37, %v708_v25  ;;  %v692_v40 = vpop.f32.mrf.mxu0  ;;  %v705_v41 = vpop.f32.mrf.mxu1 }
 0x18c   :  { %v780_v42 = vpop.f32.mrf.mxu2  ;;  %v793_v43 = vpop.f32.mrf.mxu3 }
 0x18d   :  { %v804_v44 = vpop.f32.mrf.mxu0  ;;  %v817_v45 = vpop.f32.mrf.mxu1 }
 0x18e   :  { %v849_v46 = vadd.f32 %v804_v44, %v709_v28  ;;  %v850_v47 = vadd.f32 %v817_v45, %v710_v29 }
 0x194   :  { %v830_v48 = vpop.f32.mrf.mxu2  ;;  %v843_v49 = vpop.f32.mrf.mxu3 }
 0x195   :  { %v3091_v50 = vadd.f32 %v830_v48, %v711_v0  ;;  %v3093_v51 = vadd.f32 %v843_v49, %v712_v35  ;;  %v806_v52 = vpop.f32.mrf.mxu0  ;;  %v819_v53 = vpop.f32.mrf.mxu1 }
 0x196   :  { %v1307_v53 = vperm.slane %v3098_v27, 2 }
 0x199   :  { %v1277_v18 = vpop.permute.xlu0 %1276 }
 0x19a   :  { %v1289_v28 = vpop.permute.xlu1 %1288 }
 0x19c   :  { %v832_v54 = vpop.f32.mrf.mxu2  ;;  %v845_v55 = vpop.f32.mrf.mxu3 }
 0x19d   :  { %v918_v56 = vpop.f32.mrf.mxu0  ;;  %v931_v57 = vpop.f32.mrf.mxu1  ;;  %v1308_v55 = vperm.slane %v3098_v27, 3 }
 0x19e   :  { %v987_v16 = vadd.f32 %v918_v56, %v847_v38  ;;  %v988_v17 = vadd.f32 %v931_v57, %v848_v39 }
 0x1a4   :  { %v944_v58 = vpop.f32.mrf.mxu2  ;;  %v957_v59 = vpop.f32.mrf.mxu3 }
 0x1a5   :  { %v920_v60 = vpop.f32.mrf.mxu0  ;;  %v933_v61 = vpop.f32.mrf.mxu1  ;;  %v989_v31 = vadd.f32 %v944_v58, %v849_v46  ;;  %v990_v32 = vadd.f32 %v957_v59, %v850_v47 }
 0x1ac   :  { %v946_v62 = vpop.f32.mrf.mxu2  ;;  %v959_v63 = vpop.f32.mrf.mxu3 }
 0x1ad   :  { %v970_v2 = vpop.f32.mrf.mxu0  ;;  %v983_v3 = vpop.f32.mrf.mxu1 }
 0x1ae   :  { %v991_v56 = vadd.f32 %v970_v2, %v3091_v50  ;;  %v992_v57 = vadd.f32 %v983_v3, %v3093_v51 }
 0x1b4   :  { %v1058_v4 = vpop.f32.mrf.mxu2  ;;  %v1071_v5 = vpop.f32.mrf.mxu3 }
 0x1b5   :  { %v972_v6 = vpop.f32.mrf.mxu0  ;;  %v985_v7 = vpop.f32.mrf.mxu1  ;;  %v1127_v19 = vadd.f32 %v1058_v4, %v987_v16  ;;  %v1128_v20 = vadd.f32 %v1071_v5, %v988_v17  ;;  %v1309_v16 = vperm.slane %v3098_v27, 4 }
 0x1bc   :  { %v1060_v8 = vpop.f32.mrf.mxu2  ;;  %v1073_v9 = vpop.f32.mrf.mxu3 }
 0x1bd   :  { %v1084_v10 = vpop.f32.mrf.mxu0  ;;  %v1097_v11 = vpop.f32.mrf.mxu1 }
 0x1be   :  { %v1129_v35 = vadd.f32 %v1084_v10, %v989_v31  ;;  %v1130_v36 = vadd.f32 %v1097_v11, %v990_v32 }
 0x1c4   :  { %v1110_v12 = vpop.f32.mrf.mxu2  ;;  %v1123_v13 = vpop.f32.mrf.mxu3 }
 0x1c5   :  { %v1086_v14 = vpop.f32.mrf.mxu0  ;;  %v1099_v15 = vpop.f32.mrf.mxu1  ;;  %v1131_v62 = vadd.f32 %v1110_v12, %v991_v56  ;;  %v1132_v63 = vadd.f32 %v1123_v13, %v992_v57 }
 0x1cc   :  { %v1112_v21 = vpop.f32.mrf.mxu2  ;;  %v1125_v22 = vpop.f32.mrf.mxu3 }
 0x1cd   :  { %v1198_v23 = vpop.f32.mrf.mxu0  ;;  %v1211_v24 = vpop.f32.mrf.mxu1 }
 0x1ce   :  { %v1267_v25 = vadd.f32 %v1198_v23, %v1127_v19  ;;  %v1268_v26 = vadd.f32 %v1211_v24, %v1128_v20  ;;  %v1310_v19 = vperm.slane %v3098_v27, 5 }
 0x1d0   :  { %v1279_v29 = vmul.f32 %v1277_v18, %v1267_v25  ;;  %v1280_v30 = vmul.f32 %v1277_v18, %v1268_v26 }
 0x1d2   :  { %v1291_v1 = vadd.f32 %v1289_v28, %v1279_v29  ;;  %v1292_v0 = vadd.f32 %v1289_v28, %v1280_v30 }
 0x1d4   :  { %v1297_v37 = vmax.f32 %v1291_v1, 0.0  ;;  %v1298_v38 = vmax.f32 %v1292_v0, 0.0  ;;  %v1224_v39 = vpop.f32.mrf.mxu2  ;;  %v1237_v40 = vpop.f32.mrf.mxu3 }
 0x1d5   :  { %v1269_v41 = vadd.f32 %v1224_v39, %v1129_v35  ;;  %v1270_v42 = vadd.f32 %v1237_v40, %v1130_v36  ;;  %v1200_v43 = vpop.f32.mrf.mxu0  ;;  %v1213_v44 = vpop.f32.mrf.mxu1  ;;  %v2612_v39 = vld [vmem:[%s3434_s5 + $0x4] sm:$0xf] }
 0x1d6   :  { %v1317_v45 = vmul.f32 %v1305_v33, %v1297_v37  ;;  %v1318_v48 = vmul.f32 %v1306_v34, %v1298_v38  ;;  %v2263_v38 = vld [vmem:[%s3435_s6] sm:$0xff] }
 0x1d7   :  { %v1281_v46 = vmul.f32 %v1277_v18, %v1269_v41  ;;  %v1282_v47 = vmul.f32 %v1277_v18, %v1270_v42 }
 0x1d8   :  { %v1323_v49 = vpack.c.bf16 %v1318_v48, %v1317_v45 }
 0x1d9   :  { %v1293_v52 = vadd.f32 %v1289_v28, %v1281_v46  ;;  %v1294_v54 = vadd.f32 %v1289_v28, %v1282_v47 }
 0x1da   :  { %v1332_v58 = vunpack.c.l.b16 %v1323_v49  ;;  %v1333_v59 = vunpack.c.h.b16 %v1323_v49 }
 0x1db   :  { %v1299_v60 = vmax.f32 %v1293_v52, 0.0  ;;  %v1300_v61 = vmax.f32 %v1294_v54, 0.0 }
 0x1dc   :  { %v3106_v4 = vpack.c.b16 %v1332_v58, %v1332_v58  ;;  %v3108_v5 = vpack.c.b16 %v1333_v59, %v1333_v59  ;;  %v1226_v6 = vpop.f32.mrf.mxu2  ;;  %v1239_v7 = vpop.f32.mrf.mxu3  ;;  %v1326_v58 = vld [vmem:[%s3434_s5] sm:$0xf] }
 0x1dd   :  { %v1319_v8 = vmul.f32 %v1307_v53, %v1299_v60  ;;  %v1320_v9 = vmul.f32 %v1308_v55, %v1300_v61  ;;  %v1250_v10 = vpop.f32.mrf.mxu0  ;;  %v1263_v11 = vpop.f32.mrf.mxu1 }
 0x1de   :  { %v1271_v14 = vadd.f32 %v1250_v10, %v1131_v62  ;;  %v1272_v50 = vadd.f32 %v1263_v11, %v1132_v63  ;;  %1344 = vrot.lane.b32.xlu1 %v3108_v5, %s2753_s8  ;;  %1342 = vrot.lane.b32.xlu2 %v3106_v4, %s2753_s8  ;;  %v1445_v37 = vsel %vm1360_vm10, %v3106_v4, 0  ;;  %v1448_v45 = vsel %vm1360_vm10, %v3108_v5, 0 }
 0x1df   :  { %v1324_v51 = vpack.c.bf16 %v1320_v9, %v1319_v8 }
 0x1e0   :  { %v1283_v2 = vmul.f32 %v1277_v18, %v1271_v14  ;;  %v1284_v3 = vmul.f32 %v1277_v18, %v1272_v50 }
 0x1e1   :  { %v1334_v12 = vunpack.c.l.b16 %v1324_v51  ;;  %v1335_v13 = vunpack.c.h.b16 %v1324_v51 }
 0x1e2   :  { %v1295_v15 = vadd.f32 %v1289_v28, %v1283_v2  ;;  %v1296_v17 = vadd.f32 %v1289_v28, %v1284_v3 }
 0x1e3   :  { %v3116_v20 = vpack.c.b16 %v1335_v13, %v1335_v13  ;;  %v3118_v21 = vpack.c.b16 %v1334_v12, %v1334_v12 }
 0x1e4   :  { %v1301_v22 = vmax.f32 %v1295_v15, 0.0  ;;  %v1302_v23 = vmax.f32 %v1296_v17, 0.0 }
 0x1e5   :  { %1348 = vrot.lane.b32.xlu0 %v3116_v20, %s2753_s8  ;;  %v1252_v24 = vpop.f32.mrf.mxu0  ;;  %v1265_v25 = vpop.f32.mrf.mxu1  ;;  %v1454_v55 = vsel %vm1360_vm10, %v3116_v20, 0  ;;  %v1451_v56 = vsel %vm1360_vm10, %v3118_v21, 0 }
 0x1e6   :  { %v1321_v18 = vmul.f32 %v1309_v16, %v1301_v22  ;;  %v1322_v26 = vmul.f32 %v1310_v19, %v1302_v23  ;;  %1346 = vrot.lane.b32.xlu2 %v3118_v21, %s2753_s8  ;;  %v2623_v16 = vld [vmem:[%s3434_s5 + $0x8] sm:$0xf] }
 0x1e8   :  { %v1325_v29 = vpack.c.bf16 %v1322_v26, %v1321_v18 }
 0x1ea   :  { %v1336_v28 = vunpack.c.l.b16 %v1325_v29  ;;  %v1942_v27 = vunpack.c.h.b16 %v1325_v29 }
 0x1ec   :  { %v1341_v30 = vpack.c.b16 %v1336_v28, %v1336_v28  ;;  %v1943_v31 = vpack.c.b16 %v1942_v27, %v1942_v27 }
 0x1ed   :  { %1528 = vrot.lane.b32.xlu0 %v3108_v5, %s2754_s0 }
 0x1ee   :  { %1350 = vrot.lane.b32.xlu1 %v1341_v30, %s2753_s8  ;;  %1526 = vrot.lane.b32.xlu2 %v3106_v4, %s2754_s0  ;;  %v1457_v41 = vsel %vm1360_vm10, %v1341_v30, 0 }
 0x1f5   :  { %1534 = vrot.lane.b32.xlu0 %v1341_v30, %s2754_s0 }
 0x1f6   :  { %1530 = vrot.lane.b32.xlu1 %v3118_v21, %s2754_s0  ;;  %1532 = vrot.lane.b32.xlu2 %v3116_v20, %s2754_s0 }
 0x1fd   :  { %1630 = vrot.lane.b32.xlu0 %v3106_v4, %s2755_s20 }
 0x1fe   :  { %1632 = vrot.lane.b32.xlu1 %v3108_v5, %s2755_s20  ;;  %1634 = vrot.lane.b32.xlu2 %v3118_v21, %s2755_s20 }
 0x205   :  { %1734 = vrot.lane.b32.xlu0 %v3106_v4, %s2756_s21 }
 0x206   :  { %1636 = vrot.lane.b32.xlu1 %v3116_v20, %s2755_s20  ;;  %1638 = vrot.lane.b32.xlu2 %v1341_v30, %s2755_s20 }
 0x20d   :  { %1740 = vrot.lane.b32.xlu0 %v3116_v20, %s2756_s21 }
 0x20e   :  { %1736 = vrot.lane.b32.xlu1 %v3108_v5, %s2756_s21  ;;  %1738 = vrot.lane.b32.xlu2 %v3118_v21, %s2756_s21 }
 0x215   :  { %1840 = vrot.lane.b32.xlu0 %v3108_v5, %s2757_s22 }
 0x216   :  { %1742 = vrot.lane.b32.xlu1 %v1341_v30, %s2756_s21  ;;  %1838 = vrot.lane.b32.xlu2 %v3106_v4, %s2757_s22 }
 0x21d   :  { %1846 = vrot.lane.b32.xlu0 %v1341_v30, %s2757_s22 }
 0x21e   :  { %1842 = vrot.lane.b32.xlu1 %v3118_v21, %s2757_s22  ;;  %1844 = vrot.lane.b32.xlu2 %v3116_v20, %s2757_s22 }
 0x225   :  { %1948 = vrot.lane.b32.xlu0 %v3118_v21, %s2758_s23 }
 0x226   :  { %1944 = vrot.lane.b32.xlu1 %v3106_v4, %s2758_s23  ;;  %1946 = vrot.lane.b32.xlu2 %v3108_v5, %s2758_s23 }
 0x22d   :  { %1954 = vrot.lane.b32.xlu0 %v1943_v31, %s2758_s23 }
 0x22e   :  { %1950 = vrot.lane.b32.xlu1 %v3116_v20, %s2758_s23  ;;  %1952 = vrot.lane.b32.xlu2 %v1341_v30, %s2758_s23 }
 0x235   :  { %2051 = vrot.lane.b32.xlu0 %v3106_v4, %s2759_s26 }
 0x236   :  { %2053 = vrot.lane.b32.xlu1 %v3108_v5, %s2759_s26  ;;  %2055 = vrot.lane.b32.xlu2 %v3118_v21, %s2759_s26 }
 0x238   :  { %v1343_v32 = vpop.permute.xlu2 %1342 }
 0x23d   :  { %2158 = vrot.lane.b32.xlu0 %v3106_v4, %s2760_s29 }
 0x23e   :  { %2057 = vrot.lane.b32.xlu1 %v3116_v20, %s2759_s26  ;;  %2059 = vrot.lane.b32.xlu2 %v1341_v30, %s2759_s26 }
 0x240   :  { %v1347_v33 = vpop.permute.xlu2 %1346 }
 0x245   :  { %2162 = vrot.lane.b32.xlu0 %v3118_v21, %s2760_s29 }
 0x246   :  { %2160 = vrot.lane.b32.xlu1 %v3108_v5, %s2760_s29  ;;  %2061 = vrot.lane.b32.xlu2 %v1943_v31, %s2759_s26 }
 0x248   :  { %v1527_v44 = vpop.permute.xlu2 %1526 }
 0x24d   :  { %2168 = vrot.lane.b32.xlu0 %v1943_v31, %s2760_s29 }
 0x24e   :  { %2164 = vrot.lane.b32.xlu1 %v3116_v20, %s2760_s29  ;;  %2166 = vrot.lane.b32.xlu2 %v1341_v30, %s2760_s29 }
 0x250   :  { %v1345_v34 = vpop.permute.xlu1 %1344  ;;  %v1533_v57 = vpop.permute.xlu2 %1532 }
 0x251   :  { %v1352_v1 = vsel %vm84_vm0, %v1343_v32, %v1345_v34  ;;  %v1353_v0 = vsel %vm84_vm0, %v1345_v34, %v1347_v33 }
 0x252   :  { %v1362_v35 = vsel %vm1360_vm10, %v1352_v1, 0  ;;  %v1365_v36 = vsel %vm1360_vm10, %v1353_v0, 0 }
 0x253   :  { %1383 = vmatpush.bf16.msrb.mxu2 %v1362_v35  ;;  %1396 = vmatpush.bf16.msrb.mxu3 %v1365_v36 }
 0x256   :  { %2266 = vperm.xlu1 %2681, %v2263_v38   ;;  %2613 = vmatmul.msk.bf16.vlgmr.msrb.gmra.mxu2 %vm1356_vm11, %v2612_v39 }
 0x257   :  { %1466 = vmatpush.bf16.msra.mxu3 %v1445_v37  ;;  %v1349_v40 = vpop.permute.xlu0 %1348 }
 0x258   :  { %2614 = vmatmul.msk.bf16.vlgmr.msrb.gmra.mxu3 %vm1356_vm11, %v2612_v39  ;;  %v1354_v42 = vsel %vm84_vm0, %v1347_v33, %v1349_v40  ;;  %v1635_v8 = vpop.permute.xlu2 %1634  ;;  %v2629_v33 = vld [vmem:[%s3434_s5 + $0xc] sm:$0xf] }
 0x259   :  { %v1368_v43 = vsel %vm1360_vm10, %v1354_v42, 0 }
 0x25a   :  { %1409 = vmatpush.bf16.msra.mxu0 %v1368_v43  ;;  %v2635_v43 = vld [vmem:[%s3434_s5 + $0x10] sm:$0xf] }
 0x25b   :  { %1518 = vmatpush.bf16.msrb.mxu3 %v1457_v41 }
 0x25d   :  { %2615 = vmatmul.msk.bf16.vlgmr.msra.gmra.mxu0 %vm1356_vm11, %v2612_v39 }
 0x25e   :  { %1479 = vmatpush.bf16.msrb.mxu0 %v1448_v45 }
 0x25f   :  { %v1529_v48 = vpop.permute.xlu0 %1528 }
 0x260   :  { %v1536_v46 = vsel %vm322_vm3, %v1527_v44, %v1529_v48  ;;  %v1351_v47 = vpop.permute.xlu1 %1350  ;;  %v1639_v2 = vpop.permute.xlu2 %1638 }
 0x261   :  { %v1544_v49 = vsel %vm1360_vm10, %v1536_v46, 0  ;;  %v1355_v52 = vsel %vm84_vm0, %v1349_v40, %v1351_v47  ;;  %v1374_v53 = vsel %vm1360_vm10, %v1351_v47, 0  ;;  %v1660_v24 = vsel %vm1360_vm10, %v1639_v2, 0 }
 0x262   :  { %v1371_v54 = vsel %vm1360_vm10, %v1355_v52, 0  ;;  %1565 = vmatpush.bf16.msra.mxu0 %v1544_v49  ;;  %1435 = vmatpush.bf16.msra.mxu2 %v1374_v53 }
 0x263   :  { %1422 = vmatpush.bf16.msra.mxu1 %v1371_v54 }
 0x266   :  { %1505 = vmatpush.bf16.msrb.mxu2 %v1454_v55  ;;  %2616 = vmatmul.msk.bf16.vlgmr.msra.gmra.mxu1 %vm1356_vm11, %v2612_v39 }
 0x267   :  { %1492 = vmatpush.bf16.msrb.mxu1 %v1451_v56  ;;  %2617 = vmatmul.msk.bf16.vlgmr.msra.gmra.mxu2 %vm1356_vm11, %v2612_v39  ;;  %v1535_v59 = vpop.permute.xlu0 %1534 }
 0x268   :  { %2618 = vmatmul.msk.bf16.vlgmr.msra.gmra.mxu3 %vm1356_vm11, %v1326_v58  ;;  %v1539_v60 = vsel %vm322_vm3, %v1533_v57, %v1535_v59  ;;  %v1531_v61 = vpop.permute.xlu1 %1530  ;;  %v1556_v7 = vsel %vm1360_vm10, %v1535_v59, 0  ;;  %v1739_v21 = vpop.permute.xlu2 %1738  ;;  %v2641_v59 = vld [vmem:[%s3434_s5 + $0x14] sm:$0xf] }
 0x269   :  { %v1553_v62 = vsel %vm1360_vm10, %v1539_v60, 0  ;;  %v1537_v63 = vsel %vm322_vm3, %v1529_v48, %v1531_v61  ;;  %v1538_v4 = vsel %vm322_vm3, %v1531_v61, %v1533_v57 }
 0x26a   :  { %v1547_v5 = vsel %vm1360_vm10, %v1537_v63, 0  ;;  %v1550_v6 = vsel %vm1360_vm10, %v1538_v4, 0  ;;  %1604 = vmatpush.bf16.msra.mxu3 %v1553_v62 }
 0x26b   :  { %1578 = vmatpush.bf16.msra.mxu1 %v1547_v5  ;;  %1591 = vmatpush.bf16.msra.mxu2 %v1550_v6 }
 0x26d   :  { %2619 = vmatmul.msk.bf16.vlgmr.msrb.gmra.mxu0 %vm1356_vm11, %v1326_v58 }
 0x26e   :  { %1617 = vmatpush.bf16.msrb.mxu0 %v1556_v7 }
 0x26f   :  { %v1631_v10 = vpop.permute.xlu0 %1630 }
 0x270   :  { %v1633_v9 = vpop.permute.xlu1 %1632  ;;  %v1839_v31 = vpop.permute.xlu2 %1838 }
 0x271   :  { %v1640_v11 = vsel %vm462_vm4, %v1631_v10, %v1633_v9  ;;  %v1641_v14 = vsel %vm462_vm4, %v1633_v9, %v1635_v8 }
 0x272   :  { %v1648_v50 = vsel %vm1360_vm10, %v1640_v11, 0  ;;  %v1651_v51 = vsel %vm1360_vm10, %v1641_v14, 0 }
 0x276   :  { %2620 = vmatmul.msk.bf16.vlgmr.msrb.gmra.mxu1 %vm1356_vm11, %v1326_v58 }
 0x277   :  { %2621 = vmatmul.msk.bf16.vlgmr.msrb.gmra.mxu2 %vm1356_vm11, %v1326_v58  ;;  %1669 = vmatpush.bf16.msrb.mxu1 %v1648_v50  ;;  %v1735_v19 = vpop.permute.xlu0 %1734 }
 0x278   :  { %2622 = vmatmul.msk.bf16.vlgmr.msrb.gmra.mxu3 %vm1356_vm11, %v1326_v58  ;;  %1682 = vmatpush.bf16.msrb.mxu2 %v1651_v51  ;;  %v1637_v3 = vpop.permute.xlu1 %1636  ;;  %v1845_v39 = vpop.permute.xlu2 %1844 }
 0x279   :  { %v1642_v12 = vsel %vm462_vm4, %v1635_v8, %v1637_v3  ;;  %v1643_v13 = vsel %vm462_vm4, %v1637_v3, %v1639_v2 }
 0x27a   :  { %v1654_v15 = vsel %vm1360_vm10, %v1642_v12, 0  ;;  %v1657_v17 = vsel %vm1360_vm10, %v1643_v13, 0 }
 0x27b   :  { %1695 = vmatpush.bf16.msrb.mxu3 %v1654_v15  ;;  %v2647_v15 = vld [vmem:[%s3434_s5 + $0x18] sm:$0xf] }
 0x27d   :  { %2624 = vmatmul.msk.bf16.vlgmr.msra.gmra.mxu0 %vm1356_vm11, %v2623_v16 }
 0x27e   :  { %1708 = vmatpush.bf16.msra.mxu0 %v1657_v17 }
 0x27f   :  { %v1741_v25 = vpop.permute.xlu0 %1740 }
 0x280   :  { %v1737_v20 = vpop.permute.xlu1 %1736  ;;  %v1746_v29 = vsel %vm602_vm5, %v1739_v21, %v1741_v25  ;;  %v1947_v47 = vpop.permute.xlu2 %1946 }
 0x281   :  { %v1744_v22 = vsel %vm602_vm5, %v1735_v19, %v1737_v20  ;;  %v1745_v23 = vsel %vm602_vm5, %v1737_v20, %v1739_v21  ;;  %v1758_v28 = vsel %vm1360_vm10, %v1746_v29, 0 }
 0x282   :  { %v1752_v18 = vsel %vm1360_vm10, %v1744_v22, 0  ;;  %v1755_v26 = vsel %vm1360_vm10, %v1745_v23, 0 }
 0x286   :  { %2625 = vmatmul.msk.bf16.vlgmr.msra.gmra.mxu1 %vm1356_vm11, %v2623_v16 }
 0x287   :  { %2626 = vmatmul.msk.bf16.vlgmr.msra.gmra.mxu2 %vm1356_vm11, %v2623_v16  ;;  %1721 = vmatpush.bf16.msra.mxu1 %v1660_v24  ;;  %v1841_v27 = vpop.permute.xlu0 %1840 }
 0x288   :  { %2627 = vmatmul.msk.bf16.vlgmr.msra.gmra.mxu3 %vm1356_vm11, %v2623_v16  ;;  %1773 = vmatpush.bf16.msra.mxu2 %v1752_v18  ;;  %v1743_v30 = vpop.permute.xlu1 %1742  ;;  %v1848_v34 = vsel %vm742_vm6, %v1839_v31, %v1841_v27  ;;  %v1953_v55 = vpop.permute.xlu2 %1952 }
 0x289   :  { %1786 = vmatpush.bf16.msra.mxu3 %v1755_v26  ;;  %v1747_v32 = vsel %vm602_vm5, %v1741_v25, %v1743_v30  ;;  %v1856_v0 = vsel %vm1360_vm10, %v1848_v34, 0  ;;  %v1764_v35 = vsel %vm1360_vm10, %v1743_v30, 0 }
 0x28a   :  { %v1761_v1 = vsel %vm1360_vm10, %v1747_v32, 0 }
 0x28d   :  { %2628 = vmatmul.msk.bf16.vlgmr.msrb.gmra.mxu0 %vm1356_vm11, %v2623_v16 }
 0x28e   :  { %1799 = vmatpush.bf16.msrb.mxu0 %v1758_v28 }
 0x28f   :  { %v1847_v40 = vpop.permute.xlu0 %1846 }
 0x290   :  { %v1843_v36 = vpop.permute.xlu1 %1842  ;;  %v1851_v44 = vsel %vm742_vm6, %v1845_v39, %v1847_v40  ;;  %v1868_v46 = vsel %vm1360_vm10, %v1847_v40, 0  ;;  %v2056_v6 = vpop.permute.xlu2 %2055 }
 0x291   :  { %v1849_v37 = vsel %vm742_vm6, %v1841_v27, %v1843_v36  ;;  %v1850_v41 = vsel %vm742_vm6, %v1843_v36, %v1845_v39  ;;  %v1865_v48 = vsel %vm1360_vm10, %v1851_v44, 0 }
 0x292   :  { %v1859_v38 = vsel %vm1360_vm10, %v1849_v37, 0  ;;  %v1862_v45 = vsel %vm1360_vm10, %v1850_v41, 0  ;;  %v2653_v37 = vld [vmem:[%s3434_s5 + $0x1c] sm:$0xf] }
 0x296   :  { %2630 = vmatmul.msk.bf16.vlgmr.msrb.gmra.mxu1 %vm1356_vm11, %v2629_v33 }
 0x297   :  { %2631 = vmatmul.msk.bf16.vlgmr.msrb.gmra.mxu2 %vm1356_vm11, %v2629_v33  ;;  %1812 = vmatpush.bf16.msrb.mxu1 %v1761_v1  ;;  %v1949_v52 = vpop.permute.xlu0 %1948 }
 0x298   :  { %2632 = vmatmul.msk.bf16.vlgmr.msrb.gmra.mxu3 %vm1356_vm11, %v2629_v33  ;;  %1825 = vmatpush.bf16.msrb.mxu2 %v1764_v35  ;;  %v1945_v42 = vpop.permute.xlu1 %1944  ;;  %v1957_v56 = vsel %vm882_vm7, %v1947_v47, %v1949_v52  ;;  %v2060_v50 = vpop.permute.xlu2 %2059 }
 0x299   :  { %1877 = vmatpush.bf16.msrb.mxu3 %v1856_v0  ;;  %v1956_v49 = vsel %vm882_vm7, %v1945_v42, %v1947_v47  ;;  %v1968_v61 = vsel %vm1360_vm10, %v1957_v56, 0 }
 0x29a   :  { %v1965_v53 = vsel %vm1360_vm10, %v1956_v49, 0 }
 0x29d   :  { %2633 = vmatmul.msk.bf16.vlgmr.msra.gmra.mxu0 %vm1356_vm11, %v2629_v33 }
 0x29e   :  { %1890 = vmatpush.bf16.msra.mxu0 %v1859_v38 }
 0x29f   :  { %v1955_v60 = vpop.permute.xlu0 %1954 }
 0x2a0   :  { %v1951_v54 = vpop.permute.xlu1 %1950  ;;  %v1960_v5 = vsel %vm882_vm7, %v1953_v55, %v1955_v60  ;;  %v2062_v19 = vpop.permute.xlu2 %2061 }
 0x2a1   :  { %v1958_v57 = vsel %vm882_vm7, %v1949_v52, %v1951_v54  ;;  %v1959_v58 = vsel %vm882_vm7, %v1951_v54, %v1953_v55  ;;  %v1977_v7 = vsel %vm1360_vm10, %v1960_v5, 0  ;;  %v2067_v20 = vsel %vm1022_vm8, %v2060_v50, %v2062_v19  ;;  %v2659_v52 = vld [vmem:[%s3434_s5 + $0x20] sm:$0xf] }
 0x2a2   :  { %v1971_v62 = vsel %vm1360_vm10, %v1958_v57, 0  ;;  %v1974_v63 = vsel %vm1360_vm10, %v1959_v58, 0  ;;  %v2084_v24 = vsel %vm1360_vm10, %v2067_v20, 0  ;;  %v2274_v5 = vld [vmem:[%s3436_s7] sm:$0xff]  ;;  %s2762_s7 = smov [#allocation5]  }
 0x2a3   :  { %2277 = vperm.xlu2 %2682, %v2274_v5  }
 0x2a6   :  { %2634 = vmatmul.msk.bf16.vlgmr.msra.gmra.mxu1 %vm1356_vm11, %v2629_v33 }
 0x2a7   :  { %2636 = vmatmul.msk.bf16.vlgmr.msra.gmra.mxu2 %vm1356_vm11, %v2635_v43  ;;  %1903 = vmatpush.bf16.msra.mxu1 %v1862_v45  ;;  %v2052_v8 = vpop.permute.xlu0 %2051 }
 0x2a8   :  { %2637 = vmatmul.msk.bf16.vlgmr.msra.gmra.mxu3 %vm1356_vm11, %v2635_v43  ;;  %1916 = vmatpush.bf16.msra.mxu2 %v1865_v48  ;;  %v2054_v4 = vpop.permute.xlu1 %2053  ;;  %v2167_v32 = vpop.permute.xlu2 %2166 }
 0x2a9   :  { %1929 = vmatpush.bf16.msra.mxu3 %v1868_v46  ;;  %v2063_v10 = vsel %vm1022_vm8, %v2052_v8, %v2054_v4  ;;  %v2064_v11 = vsel %vm1022_vm8, %v2054_v4, %v2056_v6 }
 0x2aa   :  { %v2072_v51 = vsel %vm1360_vm10, %v2063_v10, 0  ;;  %v2075_v2 = vsel %vm1360_vm10, %v2064_v11, 0 }
 0x2ad   :  { %2638 = vmatmul.msk.bf16.vlgmr.msrb.gmra.mxu0 %vm1356_vm11, %v2635_v43 }
 0x2ae   :  { %1986 = vmatpush.bf16.msrb.mxu0 %v1965_v53 }
 0x2af   :  { %v2159_v12 = vpop.permute.xlu0 %2158 }
 0x2b0   :  { %v2058_v9 = vpop.permute.xlu1 %2057 }
 0x2b1   :  { %v2065_v14 = vsel %vm1022_vm8, %v2056_v6, %v2058_v9  ;;  %v2066_v13 = vsel %vm1022_vm8, %v2058_v9, %v2060_v50 }
 0x2b2   :  { %v2078_v3 = vsel %vm1360_vm10, %v2065_v14, 0  ;;  %v2081_v16 = vsel %vm1360_vm10, %v2066_v13, 0 }
 0x2b6   :  { %2639 = vmatmul.msk.bf16.vlgmr.msrb.gmra.mxu1 %vm1356_vm11, %v2635_v43 }
 0x2b7   :  { %2640 = vmatmul.msk.bf16.vlgmr.msrb.gmra.mxu2 %vm1356_vm11, %v2635_v43  ;;  %1999 = vmatpush.bf16.msrb.mxu1 %v1968_v61  ;;  %v2163_v21 = vpop.permute.xlu0 %2162 }
 0x2b8   :  { %2642 = vmatmul.msk.bf16.vlgmr.msrb.gmra.mxu3 %vm1356_vm11, %v2641_v59  ;;  %2012 = vmatpush.bf16.msrb.mxu2 %v1971_v62  ;;  %v2161_v17 = vpop.permute.xlu1 %2160 }
 0x2b9   :  { %2025 = vmatpush.bf16.msrb.mxu3 %v1974_v63  ;;  %v2170_v22 = vsel %vm1162_vm9, %v2159_v12, %v2161_v17  ;;  %v2171_v23 = vsel %vm1162_vm9, %v2161_v17, %v2163_v21 }
 0x2ba   :  { %v2179_v25 = vsel %vm1360_vm10, %v2170_v22, 0  ;;  %v2182_v18 = vsel %vm1360_vm10, %v2171_v23, 0 }
 0x2bd   :  { %2643 = vmatmul.msk.bf16.vlgmr.msra.gmra.mxu0 %vm1356_vm11, %v2641_v59 }
 0x2be   :  { %2038 = vmatpush.bf16.msra.mxu0 %v1977_v7 }
 0x2bf   :  { %v2169_v33 = vpop.permute.xlu0 %2168 }
 0x2c0   :  { %v2165_v26 = vpop.permute.xlu1 %2164  ;;  %v2174_v38 = vsel %vm1162_vm9, %v2167_v32, %v2169_v33 }
 0x2c1   :  { %v2172_v28 = vsel %vm1162_vm9, %v2163_v21, %v2165_v26  ;;  %v2173_v35 = vsel %vm1162_vm9, %v2165_v26, %v2167_v32  ;;  %v2191_v40 = vsel %vm1360_vm10, %v2174_v38, 0 }
 0x2c2   :  { %v2185_v31 = vsel %vm1360_vm10, %v2172_v28, 0  ;;  %v2188_v39 = vsel %vm1360_vm10, %v2173_v35, 0 }
 0x2c6   :  { %2644 = vmatmul.msk.bf16.vlgmr.msra.gmra.mxu1 %vm1356_vm11, %v2641_v59 }
 0x2c7   :  { %2645 = vmatmul.msk.bf16.vlgmr.msra.gmra.mxu2 %vm1356_vm11, %v2641_v59  ;;  %2093 = vmatpush.bf16.msra.mxu1 %v2072_v51 }
 0x2c8   :  { %2646 = vmatmul.msk.bf16.vlgmr.msra.gmra.mxu3 %vm1356_vm11, %v2641_v59  ;;  %2106 = vmatpush.bf16.msra.mxu2 %v2075_v2 }
 0x2c9   :  { %2119 = vmatpush.bf16.msra.mxu3 %v2078_v3 }
 0x2cd   :  { %2648 = vmatmul.msk.bf16.vlgmr.msrb.gmra.mxu0 %vm1356_vm11, %v2647_v15 }
 0x2ce   :  { %2132 = vmatpush.bf16.msrb.mxu0 %v2081_v16 }
 0x2d6   :  { %2649 = vmatmul.msk.bf16.vlgmr.msrb.gmra.mxu1 %vm1356_vm11, %v2647_v15 }
 0x2d7   :  { %2650 = vmatmul.msk.bf16.vlgmr.msrb.gmra.mxu2 %vm1356_vm11, %v2647_v15  ;;  %2145 = vmatpush.bf16.msrb.mxu1 %v2084_v24 }
 0x2d8   :  { %2651 = vmatmul.msk.bf16.vlgmr.msrb.gmra.mxu3 %vm1356_vm11, %v2647_v15  ;;  %2200 = vmatpush.bf16.msrb.mxu2 %v2179_v25 }
 0x2d9   :  { %2213 = vmatpush.bf16.msrb.mxu3 %v2182_v18  ;;  %v1385_v29 = vpop.f32.mrf.mxu2 }
 0x2da   :  { %v1411_v27 = vpop.f32.mrf.mxu0 }
 0x2db   :  { %v1398_v30 = vpop.f32.mrf.mxu3 }
 0x2dd   :  { %2652 = vmatmul.msk.bf16.vlgmr.msra.gmra.mxu0 %vm1356_vm11, %v2647_v15 }
 0x2de   :  { %2226 = vmatpush.bf16.msra.mxu0 %v2185_v31 }
 0x2e1   :  { %v1387_v34 = vpop.f32.mrf.mxu2 }
 0x2e2   :  { %v1413_v0 = vpop.f32.mrf.mxu0 }
 0x2e3   :  { %v1400_v1 = vpop.f32.mrf.mxu3  ;;  %v1424_v36 = vpop.f32.mrf.mxu1 }
 0x2e6   :  { %2654 = vmatmul.msk.bf16.vlgmr.msra.gmra.mxu1 %vm1356_vm11, %v2653_v37 }
 0x2e7   :  { %2655 = vmatmul.msk.bf16.vlgmr.msra.gmra.mxu2 %vm1356_vm11, %v2653_v37  ;;  %2239 = vmatpush.bf16.msra.mxu1 %v2188_v39 }
 0x2e8   :  { %2656 = vmatmul.msk.bf16.vlgmr.msra.gmra.mxu3 %vm1356_vm11, %v2653_v37  ;;  %2252 = vmatpush.bf16.msra.mxu2 %v2191_v40 }
 0x2ea   :  { %v1437_v41 = vpop.f32.mrf.mxu2  ;;  %v1481_v43 = vpop.f32.mrf.mxu0 }
 0x2eb   :  { %v1468_v42 = vpop.f32.mrf.mxu3  ;;  %v1482_v44 = vadd.f32 %v1481_v43, %v1398_v30  ;;  %v1426_v45 = vpop.f32.mrf.mxu1 }
 0x2ec   :  { %v1469_v54 = vadd.f32 %v1468_v42, %v1385_v29 }
 0x2ed   :  { %2657 = vmatmul.msk.bf16.vlgmr.msrb.gmra.mxu0 %vm1356_vm11, %v2653_v37 }
 0x2f2   :  { %v1439_v48 = vpop.f32.mrf.mxu2  ;;  %v1483_v47 = vpop.f32.mrf.mxu0 }
 0x2f3   :  { %v1470_v46 = vpop.f32.mrf.mxu3  ;;  %v1494_v49 = vpop.f32.mrf.mxu1 }
 0x2f4   :  { %v1495_v53 = vadd.f32 %v1494_v49, %v1411_v27 }
 0x2f6   :  { %2658 = vmatmul.msk.bf16.vlgmr.msrb.gmra.mxu1 %vm1356_vm11, %v2653_v37 }
 0x2f7   :  { %2660 = vmatmul.msk.bf16.vlgmr.msrb.gmra.mxu2 %vm1356_vm11, %v2659_v52 }
 0x2f8   :  { %2661 = vmatmul.msk.bf16.vlgmr.msrb.gmra.mxu3 %vm1356_vm11, %v2659_v52 }
 0x2fa   :  { %v1507_v55 = vpop.f32.mrf.mxu2  ;;  %v1567_v58 = vpop.f32.mrf.mxu0 }
 0x2fb   :  { %v1508_v56 = vadd.f32 %v1507_v55, %v1424_v36  ;;  %v1520_v57 = vpop.f32.mrf.mxu3  ;;  %v1623_v60 = vadd.f32 %v1567_v58, %v1469_v54  ;;  %v1496_v61 = vpop.f32.mrf.mxu1 }
 0x2fc   :  { %v1521_v59 = vadd.f32 %v1520_v57, %v1437_v41 }
 0x2fd   :  { %2662 = vmatmul.msk.bf16.vlgmr.msra.gmra.mxu0 %vm1356_vm11, %v2659_v52 }
 0x302   :  { %v1509_v62 = vpop.f32.mrf.mxu2  ;;  %v1569_v4 = vpop.f32.mrf.mxu0 }
 0x303   :  { %v1522_v63 = vpop.f32.mrf.mxu3  ;;  %v1580_v6 = vpop.f32.mrf.mxu1 }
 0x304   :  { %v1624_v7 = vadd.f32 %v1580_v6, %v1482_v44 }
 0x306   :  { %2663 = vmatmul.msk.bf16.vlgmr.msra.gmra.mxu1 %vm1356_vm11, %v2659_v52 }
 0x307   :  { %2664 = vmatmul.msk.bf16.vlgmr.msra.gmra.mxu2 %vm1356_vm11, %v2659_v52 }
 0x30a   :  { %v1593_v8 = vpop.f32.mrf.mxu2  ;;  %v1619_v11 = vpop.f32.mrf.mxu0 }
 0x30b   :  { %v1625_v9 = vadd.f32 %v1593_v8, %v1495_v53  ;;  %v1606_v10 = vpop.f32.mrf.mxu3  ;;  %v1627_v50 = vadd.f32 %v1619_v11, %v1521_v59  ;;  %v1582_v51 = vpop.f32.mrf.mxu1 }
 0x30c   :  { %v1626_v14 = vadd.f32 %v1606_v10, %v1508_v56 }
 0x312   :  { %v1595_v2 = vpop.f32.mrf.mxu2  ;;  %v1621_v12 = vpop.f32.mrf.mxu0 }
 0x313   :  { %v1608_v3 = vpop.f32.mrf.mxu3  ;;  %v1671_v13 = vpop.f32.mrf.mxu1 }
 0x314   :  { %v1727_v15 = vadd.f32 %v1671_v13, %v1623_v60 }
 0x31a   :  { %v1684_v16 = vpop.f32.mrf.mxu2  ;;  %v1710_v20 = vpop.f32.mrf.mxu0 }
 0x31b   :  { %v1728_v17 = vadd.f32 %v1684_v16, %v1624_v7  ;;  %v1697_v19 = vpop.f32.mrf.mxu3  ;;  %v1730_v22 = vadd.f32 %v1710_v20, %v1626_v14  ;;  %v1673_v23 = vpop.f32.mrf.mxu1 }
 0x31c   :  { %v1729_v21 = vadd.f32 %v1697_v19, %v1625_v9  ;;  %v2267_v16 = vpop.permute.xlu1 %2266 }
 0x322   :  { %v1686_v24 = vpop.f32.mrf.mxu2  ;;  %v1712_v18 = vpop.f32.mrf.mxu0 }
 0x323   :  { %v1699_v25 = vpop.f32.mrf.mxu3  ;;  %v1723_v26 = vpop.f32.mrf.mxu1 }
 0x324   :  { %v1731_v29 = vadd.f32 %v1723_v26, %v1627_v50  ;;  %v2278_v26 = vpop.permute.xlu2 %2277 }
 0x32a   :  { %v1775_v28 = vpop.f32.mrf.mxu2  ;;  %v1801_v31 = vpop.f32.mrf.mxu0 }
 0x32b   :  { %v1831_v30 = vadd.f32 %v1775_v28, %v1727_v15  ;;  %v1788_v27 = vpop.f32.mrf.mxu3  ;;  %v1833_v33 = vadd.f32 %v1801_v31, %v1729_v21  ;;  %v1725_v34 = vpop.f32.mrf.mxu1 }
 0x32c   :  { %v1832_v32 = vadd.f32 %v1788_v27, %v1728_v17 }
 0x332   :  { %v1777_v1 = vpop.f32.mrf.mxu2  ;;  %v1803_v35 = vpop.f32.mrf.mxu0 }
 0x333   :  { %v1790_v0 = vpop.f32.mrf.mxu3  ;;  %v1814_v36 = vpop.f32.mrf.mxu1 }
 0x334   :  { %v1834_v37 = vadd.f32 %v1814_v36, %v1730_v22 }
 0x33a   :  { %v1827_v38 = vpop.f32.mrf.mxu2  ;;  %v1892_v41 = vpop.f32.mrf.mxu0 }
 0x33b   :  { %v3353_v39 = vadd.f32 %v1827_v38, %v1731_v29  ;;  %v1879_v40 = vpop.f32.mrf.mxu3  ;;  %v1816_v42 = vpop.f32.mrf.mxu1  ;;  %v1936_v51 = vadd.f32 %v1892_v41, %v1832_v32 }
 0x33c   :  { %v1935_v50 = vadd.f32 %v1879_v40, %v1831_v30 }
 0x342   :  { %v1829_v43 = vpop.f32.mrf.mxu2  ;;  %v1894_v45 = vpop.f32.mrf.mxu0 }
 0x343   :  { %v1881_v44 = vpop.f32.mrf.mxu3  ;;  %v1905_v48 = vpop.f32.mrf.mxu1 }
 0x344   :  { %v1937_v2 = vadd.f32 %v1905_v48, %v1833_v33 }
 0x34a   :  { %v1918_v46 = vpop.f32.mrf.mxu2  ;;  %v1988_v49 = vpop.f32.mrf.mxu0 }
 0x34b   :  { %v1931_v47 = vpop.f32.mrf.mxu3  ;;  %v1907_v52 = vpop.f32.mrf.mxu1  ;;  %v2044_v3 = vadd.f32 %v1988_v49, %v1935_v50  ;;  %v1938_v27 = vadd.f32 %v1918_v46, %v1834_v37  ;;  %v2413_v50 = vld [vmem:[#allocation2 + $0x1f8] sm:$0xff] }
 0x34c   :  { %v1939_v43 = vadd.f32 %v1931_v47, %v3353_v39  ;;  %2492 = vmatpush.msrb.mxu2 %v2413_v50  ;;  %v2419_v50 = vld [vmem:[#allocation2 + $0x228] sm:$0xff] }
 0x352   :  { %v1920_v53 = vpop.f32.mrf.mxu2  ;;  %v1990_v55 = vpop.f32.mrf.mxu0 }
 0x353   :  { %v1933_v54 = vpop.f32.mrf.mxu3  ;;  %v2001_v56 = vpop.f32.mrf.mxu1 }
 0x354   :  { %v2045_v12 = vadd.f32 %v2001_v56, %v1936_v51  ;;  %v2378_v51 = vld [vmem:[#allocation2 + $0xe0] sm:$0xff] }
 0x35a   :  { %v2014_v57 = vpop.f32.mrf.mxu2  ;;  %v2040_v59 = vpop.f32.mrf.mxu0 }
 0x35b   :  { %v2027_v58 = vpop.f32.mrf.mxu3  ;;  %v2003_v60 = vpop.f32.mrf.mxu1  ;;  %v2046_v13 = vadd.f32 %v2014_v57, %v1937_v2  ;;  %v2048_v45 = vadd.f32 %v2040_v59, %v1939_v43  ;;  %v2365_v59 = vld [vmem:[#allocation2 + $0x78] sm:$0xff]  ;;  %v2412_v2 = vld [vmem:[#allocation2 + $0x1f0] sm:$0xff] }
 0x35c   :  { %v2047_v34 = vadd.f32 %v2027_v58, %v1938_v27  ;;  %v2397_v58 = vld [vmem:[#allocation2 + $0x178] sm:$0xff]  ;;  %v2396_v60 = vld [vmem:[#allocation2 + $0x170] sm:$0xff]  ;;  %2432 = vmatpush.msra.mxu3 %v2365_v59  ;;  %2493 = vmatpush.msrb.mxu2 %v2412_v2  ;;  %v2407_v59 = vld [vmem:[#allocation2 + $0x1c8] sm:$0xff] }
 0x35d   :  { %2472 = vmatpush.msrb.mxu1 %v2397_v58  ;;  %v2356_v27 = vld [vmem:[#allocation2 + $0x30] sm:$0xff]  ;;  %v2350_v58 = vld [vmem:[#allocation2] sm:$0xff] }
 0x35e   :  { %v2366_v2 = vld [vmem:[#allocation2 + $0x80] sm:$0xff] }
 0x35f   :  { %2473 = vmatpush.msrb.mxu1 %v2396_v60  ;;  %v2371_v60 = vld [vmem:[#allocation2 + $0xa8] sm:$0xff] }
 0x362   :  { %v2016_v61 = vpop.f32.mrf.mxu2  ;;  %v2042_v63 = vpop.f32.mrf.mxu0 }
 0x363   :  { %v2029_v62 = vpop.f32.mrf.mxu3  ;;  %v2095_v4 = vpop.f32.mrf.mxu1  ;;  %v2364_v61 = vld [vmem:[#allocation2 + $0x70] sm:$0xff]  ;;  %v2363_v63 = vld [vmem:[#allocation2 + $0x68] sm:$0xff] }
 0x364   :  { %v2151_v15 = vadd.f32 %v2095_v4, %v2044_v3  ;;  %v2395_v62 = vld [vmem:[#allocation2 + $0x168] sm:$0xff]  ;;  %2433 = vmatpush.msra.mxu3 %v2364_v61  ;;  %v2394_v4 = vld [vmem:[#allocation2 + $0x160] sm:$0xff] }
 0x365   :  { %2474 = vmatpush.msrb.mxu1 %v2395_v62  ;;  %v2391_v3 = vld [vmem:[#allocation2 + $0x148] sm:$0xff]  ;;  %v2406_v62 = vld [vmem:[#allocation2 + $0x1c0] sm:$0xff] }
 0x366   :  { %2434 = vmatpush.msra.mxu3 %v2363_v63  ;;  %v2423_v61 = vld [vmem:[#allocation2 + $0x248] sm:$0x7f]  ;;  %v2370_v63 = vld [vmem:[#allocation2 + $0xa0] sm:$0xff] }
 0x367   :  { %2475 = vmatpush.msrb.mxu1 %v2394_v4  ;;  %v2422_v4 = vld [vmem:[#allocation2 + $0x240] sm:$0xff] }
 0x36a   :  { %v2108_v5 = vpop.f32.mrf.mxu2  ;;  %v2134_v7 = vpop.f32.mrf.mxu0 }
 0x36b   :  { %v2121_v6 = vpop.f32.mrf.mxu3  ;;  %v2097_v8 = vpop.f32.mrf.mxu1  ;;  %v2152_v17 = vadd.f32 %v2108_v5, %v2045_v12  ;;  %v2154_v38 = vadd.f32 %v2134_v7, %v2047_v34  ;;  %v2362_v5 = vld [vmem:[#allocation2 + $0x60] sm:$0xff]  ;;  %v2380_v7 = vld [vmem:[#allocation2 + $0xf0] sm:$0xff]  ;;  %v2359_v12 = vld [vmem:[#allocation2 + $0x48] sm:$0xff] }
 0x36c   :  { %v2153_v19 = vadd.f32 %v2121_v6, %v2046_v13  ;;  %v2381_v6 = vld [vmem:[#allocation2 + $0xf8] sm:$0xff]  ;;  %2435 = vmatpush.msra.mxu3 %v2362_v5 }
 0x36d   :  { %v2393_v8 = vld [vmem:[#allocation2 + $0x158] sm:$0xff]  ;;  %2452 = vmatpush.msrb.mxu0 %v2381_v6 }
 0x36e   :  { %2476 = vmatpush.msrb.mxu1 %v2393_v8  ;;  %v2377_v13 = vld [vmem:[#allocation2 + $0xd8] sm:$0xff]  ;;  %v2404_v8 = vld [vmem:[#allocation2 + $0x1b0] sm:$0xff] }
 0x36f   :  { %2453 = vmatpush.msrb.mxu0 %v2380_v7  ;;  %v2405_v5 = vld [vmem:[#allocation2 + $0x1b8] sm:$0xff] }
 0x370   :  { %v2369_v6 = vld [vmem:[#allocation2 + $0x98] sm:$0xff] }
 0x371   :  { %v2421_v7 = vld [vmem:[#allocation2 + $0x238] sm:$0xff] }
 0x372   :  { %v2110_v9 = vpop.f32.mrf.mxu2  ;;  %v2136_v11 = vpop.f32.mrf.mxu0 }
 0x373   :  { %v2123_v10 = vpop.f32.mrf.mxu3  ;;  %v2147_v14 = vpop.f32.mrf.mxu1  ;;  %v2361_v9 = vld [vmem:[#allocation2 + $0x58] sm:$0xff]  ;;  %v2392_v11 = vld [vmem:[#allocation2 + $0x150] sm:$0xff] }
 0x374   :  { %v2155_v46 = vadd.f32 %v2147_v14, %v2048_v45  ;;  %v2379_v10 = vld [vmem:[#allocation2 + $0xe8] sm:$0xff]  ;;  %v2360_v14 = vld [vmem:[#allocation2 + $0x50] sm:$0xff]  ;;  %2436 = vmatpush.msra.mxu3 %v2361_v9  ;;  %2477 = vmatpush.msrb.mxu1 %v2392_v11 }
 0x375   :  { %2454 = vmatpush.msrb.mxu0 %v2379_v10  ;;  %v2368_v9 = vld [vmem:[#allocation2 + $0x90] sm:$0xff]  ;;  %v2403_v11 = vld [vmem:[#allocation2 + $0x1a8] sm:$0xff] }
 0x376   :  { %2437 = vmatpush.msra.mxu3 %v2360_v14  ;;  %2478 = vmatpush.msrb.mxu1 %v2391_v3  ;;  %v2420_v10 = vld [vmem:[#allocation2 + $0x230] sm:$0xff]  ;;  %v2367_v14 = vld [vmem:[#allocation2 + $0x88] sm:$0xff]  ;;  %v2418_v3 = vld [vmem:[#allocation2 + $0x220] sm:$0xff] }
 0x377   :  { %2455 = vmatpush.msrb.mxu0 %v2378_v51  ;;  %v2402_v51 = vld [vmem:[#allocation2 + $0x1a0] sm:$0xff] }
 0x378   :  { %2438 = vmatpush.msra.mxu3 %v2359_v12  ;;  %v2401_v12 = vld [vmem:[#allocation2 + $0x198] sm:$0xff] }
 0x379   :  { %2456 = vmatpush.msrb.mxu0 %v2377_v13  ;;  %v2417_v13 = vld [vmem:[#allocation2 + $0x218] sm:$0xff] }
 0x37a   :  { %v2202_v20 = vpop.f32.mrf.mxu2  ;;  %v2228_v23 = vpop.f32.mrf.mxu0 }
 0x37b   :  { %v2258_v21 = vadd.f32 %v2202_v20, %v2151_v15  ;;  %v2215_v22 = vpop.f32.mrf.mxu3  ;;  %v2260_v25 = vadd.f32 %v2228_v23, %v2153_v19  ;;  %v2149_v18 = vpop.f32.mrf.mxu1  ;;  %v2411_v15 = vld [vmem:[#allocation2 + $0x1e8] sm:$0xff]  ;;  %v2376_v20 = vld [vmem:[#allocation2 + $0xd0] sm:$0xff] }
 0x37c   :  { %v2259_v24 = vadd.f32 %v2215_v22, %v2152_v17  ;;  %v2358_v17 = vld [vmem:[#allocation2 + $0x40] sm:$0xff]  ;;  %2494 = vmatpush.msrb.mxu2 %v2411_v15  ;;  %2457 = vmatpush.msrb.mxu0 %v2376_v20  ;;  %v2400_v15 = vld [vmem:[#allocation2 + $0x190] sm:$0xff] }
 0x37d   :  { %v2269_v29 = vmul.f32 %v2267_v16, %v2258_v21  ;;  %v2271_v30 = vmul.f32 %v2267_v16, %v2260_v25  ;;  %v2410_v21 = vld [vmem:[#allocation2 + $0x1e0] sm:$0xff]  ;;  %v2357_v25 = vld [vmem:[#allocation2 + $0x38] sm:$0xff]  ;;  %2439 = vmatpush.msra.mxu3 %v2358_v17  ;;  %v2399_v17 = vld [vmem:[#allocation2 + $0x188] sm:$0xff] }
 0x37e   :  { %v2270_v28 = vmul.f32 %v2267_v16, %v2259_v24  ;;  %v2389_v24 = vld [vmem:[#allocation2 + $0x138] sm:$0xff]  ;;  %2495 = vmatpush.msrb.mxu2 %v2410_v21  ;;  %v2398_v20 = vld [vmem:[#allocation2 + $0x180] sm:$0xff] }
 0x37f   :  { %v3355_v31 = vadd.f32 %v2278_v26, %v2269_v29  ;;  %v3357_v32 = vadd.f32 %v2278_v26, %v2271_v30  ;;  %v2388_v30 = vld [vmem:[#allocation2 + $0x130] sm:$0xff]  ;;  %2440 = vmatpush.msra.mxu3 %v2357_v25  ;;  %v2414_v21 = vld [vmem:[#allocation2 + $0x200] sm:$0xff] }
 0x380   :  { %v3359_v33 = vadd.f32 %v2278_v26, %v2270_v28 }
 0x381   :  { %v2285_v1 = vmax.f32 %v3355_v31, 0.0  ;;  %v2287_v35 = vmax.f32 %v3357_v32, 0.0  ;;  %2441 = vmatpush.msra.mxu3 %v2356_v27  ;;  %v2354_v31 = vld [vmem:[#allocation2 + $0x20] sm:$0xff]  ;;  %v2409_v32 = vld [vmem:[#allocation2 + $0x1d8] sm:$0xff] }
 0x382   :  { %v2204_v0 = vpop.f32.mrf.mxu2  ;;  %v2286_v36 = vmax.f32 %v3359_v33, 0.0  ;;  %v2230_v41 = vpop.f32.mrf.mxu0  ;;  %v2353_v33 = vld [vmem:[#allocation2 + $0x18] sm:$0xff]  ;;  %2496 = vmatpush.msrb.mxu2 %v2409_v32 }
 0x383   :  { %v2217_v40 = vpop.f32.mrf.mxu3  ;;  %2299 = vrot.lane.b32.xlu1 %v2287_v35, %s2753_s8  ;;  %v2241_v37 = vpop.f32.mrf.mxu1  ;;  %v2355_v41 = vld [vmem:[#allocation2 + $0x28] sm:$0xff] }
 0x384   :  { %v2683_v42 = vpack.i.bf16 %v2286_v36, %v2285_v1  ;;  %v2261_v44 = vadd.f32 %v2241_v37, %v2154_v38  ;;  %v2387_v38 = vld [vmem:[#allocation2 + $0x128] sm:$0xff]  ;;  %v2386_v37 = vld [vmem:[#allocation2 + $0x120] sm:$0xff]  ;;  %2442 = vmatpush.msra.mxu3 %v2355_v41 }
 0x386   :  { %2684 = vrot.lane.b32.xlu0 %v2683_v42, %s2753_s8  ;;  %v2272_v48 = vmul.f32 %v2267_v16, %v2261_v44  ;;  %2443 = vmatpush.msra.mxu3 %v2354_v31 }
 0x388   :  { %v3373_v49 = vadd.f32 %v2278_v26, %v2272_v48  ;;  %2444 = vmatpush.msra.mxu3 %v2353_v33 }
 0x38a   :  { %v2254_v52 = vpop.f32.mrf.mxu2  ;;  %v2288_v54 = vmax.f32 %v3373_v49, 0.0  ;;  %v2383_v49 = vld [vmem:[#allocation2 + $0x108] sm:$0xff] }
 0x38b   :  { %v2262_v53 = vadd.f32 %v2254_v52, %v2155_v46  ;;  %v2243_v55 = vpop.f32.mrf.mxu1 }
 0x38c   :  { %2301 = vrot.lane.b32.xlu2 %v2288_v54, %s2753_s8  ;;  %v2384_v55 = vld [vmem:[#allocation2 + $0x110] sm:$0xff] }
 0x38d   :  { %v2273_v56 = vmul.f32 %v2267_v16, %v2262_v53  ;;  %v2390_v16 = vld [vmem:[#allocation2 + $0x140] sm:$0xff] }
 0x38e   :  { %2479 = vmatpush.msrb.mxu1 %v2390_v16  ;;  %v2374_v53 = vld [vmem:[#allocation2 + $0xc0] sm:$0xff]  ;;  %v2416_v16 = vld [vmem:[#allocation2 + $0x210] sm:$0xff] }
 0x38f   :  { %v3379_v57 = vadd.f32 %v2278_v26, %v2273_v56  ;;  %v2375_v26 = vld [vmem:[#allocation2 + $0xc8] sm:$0xff]  ;;  %v2352_v56 = vld [vmem:[#allocation2 + $0x10] sm:$0xff] }
 0x390   :  { %2480 = vmatpush.msrb.mxu1 %v2389_v24  ;;  %2458 = vmatpush.msrb.mxu0 %v2375_v26 }
 0x391   :  { %v2289_v39 = vmax.f32 %v3379_v57, 0.0  ;;  %2445 = vmatpush.msra.mxu3 %v2352_v56  ;;  %v2408_v57 = vld [vmem:[#allocation2 + $0x1d0] sm:$0xff] }
 0x392   :  { %v2256_v47 = vpop.f32.mrf.mxu2  ;;  %2481 = vmatpush.msrb.mxu1 %v2388_v30  ;;  %2459 = vmatpush.msrb.mxu0 %v2374_v53 }
 0x393   :  { %2303 = vrot.lane.b32.xlu0 %v2289_v39, %s2753_s8  ;;  %v2382_v47 = vld [vmem:[#allocation2 + $0x100] sm:$0xff]  ;;  %2497 = vmatpush.msrb.mxu2 %v2408_v57  ;;  %s2538_s8 = sshll.u32 %s2762_s7, 4  ;;  %s2539_s8 = int_to_ptr.vmem [resolvable:$true] %s2538_s8 }
 0x394   :  { %2482 = vmatpush.msrb.mxu1 %v2387_v38 }
 0x395   :  { %2498 = vmatpush.msrb.mxu2 %v2407_v59 }
 0x396   :  { %2483 = vmatpush.msrb.mxu1 %v2386_v37 }
 0x397   :  { %2499 = vmatpush.msrb.mxu2 %v2406_v62 }
 0x399   :  { %2500 = vmatpush.msrb.mxu2 %v2405_v5 }
 0x39b   :  { %2501 = vmatpush.msrb.mxu2 %v2404_v8 }
 0x39d   :  { %2502 = vmatpush.msrb.mxu2 %v2403_v11 }
 0x39f   :  { %2503 = vmatpush.msrb.mxu2 %v2402_v51 }
 0x3a1   :  { %2504 = vmatpush.msrb.mxu2 %v2401_v12 }
 0x3a3   :  { %2505 = vmatpush.msrb.mxu2 %v2400_v15 }
 0x3a5   :  { %2506 = vmatpush.msrb.mxu2 %v2399_v17 }
 0x3a7   :  { %2507 = vmatpush.msrb.mxu2 %v2398_v20 }
 0x3f5   :  { %v2300_v18 = vpop.permute.xlu1 %2299 }
 0x3f8   :  { %v2685_v19 = vpop.permute.xlu0 %2684 }
 0x3f9   :  { %v2687_v22 = vunpack.i.h.bf16 %v2685_v19  ;;  %v2686_v23 = vunpack.i.l.bf16 %v2685_v19  ;;  %v2415_v19 = vld [vmem:[#allocation2 + $0x208] sm:$0xff] }
 0x3fb   :  { %v2307_v29 = vsel %vm84_vm0, %v2687_v22, %v2300_v18  ;;  %v2306_v28 = vsel %vm84_vm0, %v2686_v23, %v2687_v22 }
 0x3fc   :  { %v3389_v34 = vmax.f32 %v2285_v1, %v2306_v28  ;;  %v3393_v0 = vmax.f32 %v2286_v36, %v2307_v29  ;;  %v2385_v1 = vld [vmem:[#allocation2 + $0x118] sm:$0xff]  ;;  %v2302_v36 = vpop.permute.xlu2 %2301 }
 0x3fd   :  { %v2308_v42 = vsel %vm84_vm0, %v2300_v18, %v2302_v36  ;;  %2484 = vmatpush.msrb.mxu1 %v2385_v1 }
 0x3fe   :  { %v2688_v40 = vpack.i.bf16 %v3393_v0, %v3389_v34  ;;  %v3406_v48 = vmax.f32 %v2287_v35, %v2308_v42  ;;  %v2373_v35 = vld [vmem:[#allocation2 + $0xb8] sm:$0xff] }
 0x3ff   :  { %2485 = vmatpush.msrb.mxu1 %v2384_v55  ;;  %2460 = vmatpush.msrb.mxu0 %v2373_v35 }
 0x400   :  { %2689 = vrot.lane.b32.xlu1 %v2688_v40, %s2755_s20 }
 0x401   :  { %2486 = vmatpush.msrb.mxu1 %v2383_v49 }
 0x403   :  { %2487 = vmatpush.msrb.mxu1 %v2382_v47 }
 0x405   :  { %v2304_v43 = vpop.permute.xlu0 %2303 }
 0x406   :  { %v2309_v44 = vsel %vm84_vm0, %v2302_v36, %v2304_v43  ;;  %v3402_v45 = vmax.f32 %v2289_v39, %v2304_v43  ;;  %v2372_v39 = vld [vmem:[#allocation2 + $0xb0] sm:$0xff] }
 0x407   :  { %v3410_v46 = vmax.f32 %v2288_v54, %v2309_v44  ;;  %v2351_v54 = vld [vmem:[#allocation2 + $0x8] sm:$0xff]  ;;  %2461 = vmatpush.msrb.mxu0 %v2372_v39 }
 0x408   :  { %2333 = vrot.lane.b32.xlu0 %v3402_v45, %s2755_s20  ;;  %2446 = vmatpush.msra.mxu3 %v2351_v54 }
 0x409   :  { %v2693_v52 = vpack.i.bf16 %v3406_v48, %v3410_v46  ;;  %2462 = vmatpush.msrb.mxu0 %v2371_v60 }
 0x40a   :  { %2447 = vmatpush.msra.mxu3 %v2350_v58 }
 0x40b   :  { %2694 = vrot.lane.b32.xlu2 %v2693_v52, %s2755_s20  ;;  %2463 = vmatpush.msrb.mxu0 %v2370_v63 }
 0x40c   :  { %2665 = vmatpush.msk.msrb.mxu3 %vm2428_vm12, %v2423_v61 }
 0x40d   :  { %2464 = vmatpush.msrb.mxu0 %v2369_v6 }
 0x40e   :  { %2519 = vmatpush.msrb.mxu3 %v2422_v4 }
 0x40f   :  { %2465 = vmatpush.msrb.mxu0 %v2368_v9 }
 0x410   :  { %2520 = vmatpush.msrb.mxu3 %v2421_v7 }
 0x411   :  { %2466 = vmatpush.msrb.mxu0 %v2367_v14 }
 0x412   :  { %2521 = vmatpush.msrb.mxu3 %v2420_v10 }
 0x413   :  { %2467 = vmatpush.msrb.mxu0 %v2366_v2 }
 0x414   :  { %2522 = vmatpush.msrb.mxu3 %v2419_v50 }
 0x416   :  { %2523 = vmatpush.msrb.mxu3 %v2418_v3 }
 0x418   :  { %2524 = vmatpush.msrb.mxu3 %v2417_v13 }
 0x41a   :  { %2525 = vmatpush.msrb.mxu3 %v2416_v16 }
 0x41c   :  { %2526 = vmatpush.msrb.mxu3 %v2415_v19 }
 0x41e   :  { %2527 = vmatpush.msrb.mxu3 %v2414_v21 }
 0x465   :  { %v2695_v22 = vpop.permute.xlu2 %2694 }
 0x466   :  { %v2697_v23 = vunpack.i.h.bf16 %v2695_v22  ;;  %v2696_v24 = vunpack.i.l.bf16 %v2695_v22 }
 0x468   :  { %v2338_v25 = vsel %vm462_vm4, %v2697_v23, %v2696_v24 }
 0x469   :  { %v2347_v18 = vmax.f32 %v3406_v48, %v2338_v25 }
 0x46b   :  { %2488 = vmatmul.f32.vlgmr.msrb.gmra.mxu1 %v2347_v18 }
 0x472   :  { %v2690_v26 = vpop.permute.xlu1 %2689 }
 0x473   :  { %v2692_v29 = vunpack.i.h.bf16 %v2690_v26  ;;  %v2691_v28 = vunpack.i.l.bf16 %v2690_v26 }
 0x475   :  { %v2337_v30 = vsel %vm462_vm4, %v2692_v29, %v2697_v23  ;;  %v2336_v27 = vsel %vm462_vm4, %v2691_v28, %v2692_v29 }
 0x476   :  { %v2346_v38 = vmax.f32 %v3393_v0, %v2337_v30  ;;  %v2345_v40 = vmax.f32 %v3389_v34, %v2336_v27 }
 0x478   :  { %2448 = vmatmul.f32.vlgmr.msra.gmra.mxu3 %v2345_v40  ;;  %2468 = vmatmul.f32.vlgmr.msrb.gmra.mxu0 %v2346_v38 }
 0x47a   :  { %v2334_v41 = vpop.permute.xlu0 %2333 }
 0x47b   :  { %v2339_v37 = vsel %vm462_vm4, %v2696_v24, %v2334_v41  ;;  %v2349_v1 = vmax.f32 %v3402_v45, %v2334_v41 }
 0x47c   :  { %v2348_v31 = vmax.f32 %v3410_v46, %v2339_v37 }
 0x47e   :  { %2508 = vmatmul.f32.vlgmr.msrb.gmra.mxu2 %v2348_v31 }
 0x480   :  { %2666 = vmatmul.msk.f32.vlgmr.msrb.gmra.mxu3 %vm2424_vm13, %v2349_v1 }
 0x4e8   :  { %v2489_v43 = vpop.f32.mrf.mxu1 }
 0x4f5   :  { %v2469_v33 = vpop.f32.mrf.mxu0 }
 0x4fb   :  { %v2449_v36 = vpop.f32.mrf.mxu3 }
 0x4fc   :  { %v2470_v42 = vadd.f32 %v2469_v33, %v2449_v36 }
 0x4fe   :  { %v2490_v44 = vadd.f32 %v2489_v43, %v2470_v42 }
 0x501   :  { %v2509_v0 = vpop.f32.mrf.mxu2 }
 0x502   :  { %v2510_v34 = vadd.f32 %v2509_v0, %v2490_v44 }
 0x503   :  { %v2529_v48 = vpop.f32.mrf.mxu3 }
 0x504   :  { %v2530_v46 = vadd.f32 %v2529_v48, %v2510_v34 }
 0x506   :  { %2532 = vst [vmem:[#allocation5] sm:$0xff] %v2530_v46 }
 0x507   :  { %2543 = dma.vmem_to_hbm [thread:$0]  %s2539_s8, 128, %s2541_s3, [#allocation4]  }
 0x508   :  { %2748 = dma.done.wait [#allocation4], 128  }
 0x509   :  { %2749 = vsyncadd [#allocation4], 4294967168 }
 0x50a   :  { %2548 = vsyncpa [#allocation3], 1 }
 0x50b   :  { %2549 = vsyncpa [#allocation4], 1 }

</bundles_post_ra>
